<compile_context>
chip_gen: v7x
topology: tpu7x:2x2x1
jax: 0.10.0
libtpu: 0.0.40
codegen_flags: <defaults>
</compile_context>

<pallas_src>
import functools

import jax
import jax.numpy as jnp
from jax.experimental import pallas as pl
from jax.experimental.pallas import tpu as pltpu


def _base_conv_kernel(x_ref, w_ref, shift_ref, out_ref, patch_ref,
                      *, K, stride, Ho, Wo, Cin):
    """One grid step = one image of the batch (channel-major).

    x_ref     : (1, Cin, Hp, Wp)        zero-padded bf16 input tile
    w_ref     : (Cout, K*K*Cin)         bf16 weights with BN scale folded in
    shift_ref : (Cout, 1)               f32 BN shift (beta - mean*scale)
    out_ref   : (1, Cout, Ho*Wo)        f32 output, lane-dense (Ho*Wo lanes)
    patch_ref : (K*K*Cin, Ho*Wo)        bf16 VMEM scratch (im2col patch)
    """
    x = x_ref[0]                                          # (Cin, Hp, Wp) bf16

    # im2col into VMEM scratch: row block t = ky*K + kx holds the Cin channels
    # of tap (ky, kx), flattened over output pixels (lane axis = Ho*Wo).
    for ky in range(K):
        for kx in range(K):
            t = ky * K + kx
            tap = x[:, ky:ky + stride * Ho:stride,
                       kx:kx + stride * Wo:stride]        # (Cin, Ho, Wo)
            patch_ref[t * Cin:(t + 1) * Cin, :] = tap.reshape(Cin, Ho * Wo)

    # Single fused MXU GEMM, bf16 operands, f32 accumulate.
    acc = jnp.dot(w_ref[...], patch_ref[...],
                  preferred_element_type=jnp.float32)     # (Cout, Ho*Wo) f32

    # BN shift (scale already folded into the weights) + SiLU (via EUP tanh).
    y = acc + shift_ref[...]                              # broadcast (Cout, 1)
    y = y * (0.5 * (jnp.tanh(0.5 * y) + 1.0))             # y * sigmoid(y)
    out_ref[...] = y[None].astype(out_ref.dtype)


def base_conv_forward(x_nchw, conv_w_oihw, bn_gamma, bn_beta, bn_mean, bn_var,
                      *, stride=1, eps=1e-5):
    """BaseConv.forward: act(bn(conv(x))).  Input / output are NCHW."""
    N, Cin, H, W = x_nchw.shape
    Cout, Cin_w, K, K2 = conv_w_oihw.shape
    assert Cin_w == Cin and K == K2
    pad = (K - 1) // 2
    Hp, Wp = H + 2 * pad, W + 2 * pad
    Ho = (H + 2 * pad - K) // stride + 1
    Wo = (W + 2 * pad - K) // stride + 1
    KKC = K * K * Cin

    # One-time bf16 cast + spatial zero-pad (channel-major, stays NCHW).
    x_pad = jnp.pad(x_nchw.astype(jnp.bfloat16),
                    ((0, 0), (0, 0), (pad, pad), (pad, pad)))

    # Fold BatchNorm (eval mode): scale into the weights, keep only the shift.
    scale = (bn_gamma / jnp.sqrt(bn_var + eps)).astype(jnp.float32)     # (Cout,)
    shift = (bn_beta - bn_mean * scale).reshape(Cout, 1).astype(jnp.float32)
    w_folded = conv_w_oihw.astype(jnp.float32) * scale[:, None, None, None]
    # OIHW -> (Cout, K, K, Cin) -> (Cout, K*K*Cin); row order matches the
    # im2col layout built in the kernel: index (ky*K + kx)*Cin + cin.
    w2d = jnp.transpose(w_folded, (0, 2, 3, 1)).reshape(Cout, KKC)
    w2d = w2d.astype(jnp.bfloat16)

    kernel = functools.partial(_base_conv_kernel, K=K, stride=stride,
                               Ho=Ho, Wo=Wo, Cin=Cin)

    out = pl.pallas_call(
        kernel,
        out_shape=jax.ShapeDtypeStruct((N, Cout, Ho * Wo), jnp.float32),
        grid_spec=pltpu.PrefetchScalarGridSpec(
            num_scalar_prefetch=0,
            grid=(N,),
            in_specs=[
                pl.BlockSpec((1, Cin, Hp, Wp), lambda b: (b, 0, 0, 0)),
                pl.BlockSpec((Cout, KKC), lambda b: (0, 0)),    # resident
                pl.BlockSpec((Cout, 1), lambda b: (0, 0)),      # resident
            ],
            out_specs=pl.BlockSpec((1, Cout, Ho * Wo), lambda b: (b, 0, 0)),
            scratch_shapes=[pltpu.VMEM((KKC, Ho * Wo), jnp.bfloat16)],
        ),
        compiler_params=pltpu.CompilerParams(
            dimension_semantics=("parallel",),   # batch shards across TCs (v7x)
            # Explicit budget: plenty for these tiles, leaves headroom on
            # v7x's 64 MiB VMEM while exceeding the 16/32 MiB scoped defaults.
            vmem_limit_bytes=48 * 1024 * 1024,
        ),
    )(x_pad, w2d, shift)

    # (N, Cout, Ho*Wo) -> (N, Cout, Ho, Wo): trivial split of the last dim.
    return out.reshape(N, Cout, Ho, Wo)


def _reference(x_nchw, conv_w_oihw, bn_gamma, bn_beta, bn_mean, bn_var,
               *, stride=1, eps=1e-5):
    """Pure-JAX f32 reference for correctness checking."""
    K = conv_w_oihw.shape[-1]
    pad = (K - 1) // 2
    y = jax.lax.conv_general_dilated(
        x_nchw.astype(jnp.float32), conv_w_oihw.astype(jnp.float32),
        window_strides=(stride, stride), padding=[(pad, pad), (pad, pad)],
        dimension_numbers=("NCHW", "OIHW", "NCHW"))
    scale = (bn_gamma / jnp.sqrt(bn_var + eps)).reshape(1, -1, 1, 1)
    shift = (bn_beta - bn_mean * bn_gamma / jnp.sqrt(bn_var + eps)
             ).reshape(1, -1, 1, 1)
    y = y * scale + shift
    return y * jax.nn.sigmoid(y)


if __name__ == "__main__":
    # BaseConv(in_channels=4, out_channels=8, ksize=3, stride=1, act='silu')
    N, Cin, H, W = 2, 4, 16, 16
    Cout, K, stride = 8, 3, 1

    key = jax.random.PRNGKey(0)
    k_x, k_w, k_g, k_b, k_m, k_v = jax.random.split(key, 6)

    x = jax.random.normal(k_x, (N, Cin, H, W), dtype=jnp.float32)
    conv_w = jax.random.normal(k_w, (Cout, Cin, K, K), dtype=jnp.float32) * 0.1
    bn_gamma = 1.0 + 0.1 * jax.random.normal(k_g, (Cout,), dtype=jnp.float32)
    bn_beta = 0.1 * jax.random.normal(k_b, (Cout,), dtype=jnp.float32)
    bn_mean = 0.1 * jax.random.normal(k_m, (Cout,), dtype=jnp.float32)
    bn_var = jnp.abs(jax.random.normal(k_v, (Cout,), dtype=jnp.float32)) + 0.5

    out = base_conv_forward(x, conv_w, bn_gamma, bn_beta, bn_mean, bn_var,
                            stride=stride)
    out = jax.block_until_ready(out)

    ref = _reference(x, conv_w, bn_gamma, bn_beta, bn_mean, bn_var,
                     stride=stride)
    assert out.shape == (N, Cout, H, W)
    # bf16 MXU operands with f32 accumulation -> compare at bf16-level tolerance.
    assert jnp.allclose(out, ref, atol=2e-2, rtol=2e-2)

    print("KERNEL_OK")
</pallas_src>

<mosaic_0001>
module attributes {stable_mosaic.version = 11 : i64} {
  func.func @_base_conv_kernel(%arg0: i32, %arg1: memref<1x4x18x18xbf16, #tpu.memory_space<vmem>>, %arg2: memref<8x36xbf16, #tpu.memory_space<vmem>>, %arg3: memref<8x1xf32, #tpu.memory_space<vmem>>, %arg4: memref<1x8x256xf32, #tpu.memory_space<vmem>>, %arg5: memref<36x256xbf16, #tpu.memory_space<vmem>>) attributes {dimension_semantics = [#tpu.dimension_semantics<parallel>], iteration_bounds = array<i64: 2>, scalar_prefetch = 0 : i64, scratch_operands = 1 : i64, tpu.core_type = #tpu.core_type<tc>, window_params = [{transform_indices = @transform_0, window_bounds = array<i64: 1, 4, 18, 18>}, {pipeline_mode = #tpu.pipeline_mode<synchronous>, transform_indices = @transform_1, window_bounds = array<i64: 8, 36>}, {pipeline_mode = #tpu.pipeline_mode<synchronous>, transform_indices = @transform_2, window_bounds = array<i64: 8, 1>}, {transform_indices = @transform_3, window_bounds = array<i64: 1, 8, 256>}]} {
    %c0 = arith.constant 0 : index
    %c0_0 = arith.constant 0 : index
    %c0_1 = arith.constant 0 : index
    %c0_2 = arith.constant 0 : index
    %0 = vector.load %arg1[%c0, %c0_0, %c0_1, %c0_2] : memref<1x4x18x18xbf16, #tpu.memory_space<vmem>>, vector<1x4x18x18xbf16>
    %1 = vector.shape_cast %0 : vector<1x4x18x18xbf16> to vector<4x18x18xbf16>
    %2 = vector.extract_strided_slice %1 {offsets = [0, 0, 0], sizes = [4, 16, 16], strides = [1, 1, 1]} : vector<4x18x18xbf16> to vector<4x16x16xbf16>
    %3 = vector.shape_cast %2 : vector<4x16x16xbf16> to vector<4x256xbf16>
    %c0_3 = arith.constant 0 : index
    %c0_4 = arith.constant 0 : index
    %4 = vector.load %arg5[%c0_3, %c0_4] : memref<36x256xbf16, #tpu.memory_space<vmem>>, vector<4x256xbf16>
    tpu.vector_store %arg5[%c0_3, %c0_4], %3 {strides = array<i32>} : memref<36x256xbf16, #tpu.memory_space<vmem>>, vector<4x256xbf16>,
    %5 = vector.extract_strided_slice %1 {offsets = [0, 0, 1], sizes = [4, 16, 16], strides = [1, 1, 1]} : vector<4x18x18xbf16> to vector<4x16x16xbf16>
    %6 = vector.shape_cast %5 : vector<4x16x16xbf16> to vector<4x256xbf16>
    %c4 = arith.constant 4 : index
    %c0_5 = arith.constant 0 : index
    %7 = vector.load %arg5[%c4, %c0_5] : memref<36x256xbf16, #tpu.memory_space<vmem>>, vector<4x256xbf16>
    tpu.vector_store %arg5[%c4, %c0_5], %6 {strides = array<i32>} : memref<36x256xbf16, #tpu.memory_space<vmem>>, vector<4x256xbf16>,
    %8 = vector.extract_strided_slice %1 {offsets = [0, 0, 2], sizes = [4, 16, 16], strides = [1, 1, 1]} : vector<4x18x18xbf16> to vector<4x16x16xbf16>
    %9 = vector.shape_cast %8 : vector<4x16x16xbf16> to vector<4x256xbf16>
    %c8 = arith.constant 8 : index
    %c0_6 = arith.constant 0 : index
    %10 = vector.load %arg5[%c8, %c0_6] : memref<36x256xbf16, #tpu.memory_space<vmem>>, vector<4x256xbf16>
    tpu.vector_store %arg5[%c8, %c0_6], %9 {strides = array<i32>} : memref<36x256xbf16, #tpu.memory_space<vmem>>, vector<4x256xbf16>,
    %11 = vector.extract_strided_slice %1 {offsets = [0, 1, 0], sizes = [4, 16, 16], strides = [1, 1, 1]} : vector<4x18x18xbf16> to vector<4x16x16xbf16>
    %12 = vector.shape_cast %11 : vector<4x16x16xbf16> to vector<4x256xbf16>
    %c12 = arith.constant 12 : index
    %c0_7 = arith.constant 0 : index
    %13 = vector.load %arg5[%c12, %c0_7] : memref<36x256xbf16, #tpu.memory_space<vmem>>, vector<4x256xbf16>
    tpu.vector_store %arg5[%c12, %c0_7], %12 {strides = array<i32>} : memref<36x256xbf16, #tpu.memory_space<vmem>>, vector<4x256xbf16>,
    %14 = vector.extract_strided_slice %1 {offsets = [0, 1, 1], sizes = [4, 16, 16], strides = [1, 1, 1]} : vector<4x18x18xbf16> to vector<4x16x16xbf16>
    %15 = vector.shape_cast %14 : vector<4x16x16xbf16> to vector<4x256xbf16>
    %c16 = arith.constant 16 : index
    %c0_8 = arith.constant 0 : index
    %16 = vector.load %arg5[%c16, %c0_8] : memref<36x256xbf16, #tpu.memory_space<vmem>>, vector<4x256xbf16>
    tpu.vector_store %arg5[%c16, %c0_8], %15 {strides = array<i32>} : memref<36x256xbf16, #tpu.memory_space<vmem>>, vector<4x256xbf16>,
    %17 = vector.extract_strided_slice %1 {offsets = [0, 1, 2], sizes = [4, 16, 16], strides = [1, 1, 1]} : vector<4x18x18xbf16> to vector<4x16x16xbf16>
    %18 = vector.shape_cast %17 : vector<4x16x16xbf16> to vector<4x256xbf16>
    %c20 = arith.constant 20 : index
    %c0_9 = arith.constant 0 : index
    %19 = vector.load %arg5[%c20, %c0_9] : memref<36x256xbf16, #tpu.memory_space<vmem>>, vector<4x256xbf16>
    tpu.vector_store %arg5[%c20, %c0_9], %18 {strides = array<i32>} : memref<36x256xbf16, #tpu.memory_space<vmem>>, vector<4x256xbf16>,
    %20 = vector.extract_strided_slice %1 {offsets = [0, 2, 0], sizes = [4, 16, 16], strides = [1, 1, 1]} : vector<4x18x18xbf16> to vector<4x16x16xbf16>
    %21 = vector.shape_cast %20 : vector<4x16x16xbf16> to vector<4x256xbf16>
    %c24 = arith.constant 24 : index
    %c0_10 = arith.constant 0 : index
    %22 = vector.load %arg5[%c24, %c0_10] : memref<36x256xbf16, #tpu.memory_space<vmem>>, vector<4x256xbf16>
    tpu.vector_store %arg5[%c24, %c0_10], %21 {strides = array<i32>} : memref<36x256xbf16, #tpu.memory_space<vmem>>, vector<4x256xbf16>,
    %23 = vector.extract_strided_slice %1 {offsets = [0, 2, 1], sizes = [4, 16, 16], strides = [1, 1, 1]} : vector<4x18x18xbf16> to vector<4x16x16xbf16>
    %24 = vector.shape_cast %23 : vector<4x16x16xbf16> to vector<4x256xbf16>
    %c28 = arith.constant 28 : index
    %c0_11 = arith.constant 0 : index
    %25 = vector.load %arg5[%c28, %c0_11] : memref<36x256xbf16, #tpu.memory_space<vmem>>, vector<4x256xbf16>
    tpu.vector_store %arg5[%c28, %c0_11], %24 {strides = array<i32>} : memref<36x256xbf16, #tpu.memory_space<vmem>>, vector<4x256xbf16>,
    %26 = vector.extract_strided_slice %1 {offsets = [0, 2, 2], sizes = [4, 16, 16], strides = [1, 1, 1]} : vector<4x18x18xbf16> to vector<4x16x16xbf16>
    %27 = vector.shape_cast %26 : vector<4x16x16xbf16> to vector<4x256xbf16>
    %c32 = arith.constant 32 : index
    %c0_12 = arith.constant 0 : index
    %28 = vector.load %arg5[%c32, %c0_12] : memref<36x256xbf16, #tpu.memory_space<vmem>>, vector<4x256xbf16>
    tpu.vector_store %arg5[%c32, %c0_12], %27 {strides = array<i32>} : memref<36x256xbf16, #tpu.memory_space<vmem>>, vector<4x256xbf16>,
    %c0_13 = arith.constant 0 : index
    %c0_14 = arith.constant 0 : index
    %29 = vector.load %arg2[%c0_13, %c0_14] : memref<8x36xbf16, #tpu.memory_space<vmem>>, vector<8x36xbf16>
    %c0_15 = arith.constant 0 : index
    %c0_16 = arith.constant 0 : index
    %30 = vector.load %arg5[%c0_15, %c0_16] : memref<36x256xbf16, #tpu.memory_space<vmem>>, vector<36x256xbf16>
    %cst = arith.constant dense<0.000000e+00> : vector<8x256xf32>
    %31 = tpu.matmul %29, %30, %cst {dimension_numbers = #tpu.dot_dimension_numbers<[1], [0], [0], [1], [0, 0, 1, 1], [], []>} : vector<8x36xbf16>, vector<36x256xbf16>, vector<8x256xf32> -> vector<8x256xf32>
    %c0_17 = arith.constant 0 : index
    %c0_18 = arith.constant 0 : index
    %32 = vector.load %arg3[%c0_17, %c0_18] : memref<8x1xf32, #tpu.memory_space<vmem>>, vector<8x1xf32>
    %33 = vector.broadcast %32 : vector<8x1xf32> to vector<8x256xf32>
    %34 = arith.addf %31, %33 : vector<8x256xf32>
    %cst_19 = arith.constant 5.000000e-01 : f32
    %35 = vector.broadcast %cst_19 : f32 to vector<8x256xf32>
    %36 = arith.mulf %35, %34 : vector<8x256xf32>
    %37 = math.tanh %36 : vector<8x256xf32>
    %cst_20 = arith.constant 1.000000e+00 : f32
    %38 = vector.broadcast %cst_20 : f32 to vector<8x256xf32>
    %39 = arith.addf %37, %38 : vector<8x256xf32>
    %cst_21 = arith.constant 5.000000e-01 : f32
    %40 = vector.broadcast %cst_21 : f32 to vector<8x256xf32>
    %41 = arith.mulf %40, %39 : vector<8x256xf32>
    %42 = arith.mulf %34, %41 : vector<8x256xf32>
    %43 = vector.shape_cast %42 : vector<8x256xf32> to vector<1x8x256xf32>
    %c0_22 = arith.constant 0 : index
    %c0_23 = arith.constant 0 : index
    %c0_24 = arith.constant 0 : index
    %44 = vector.load %arg4[%c0_22, %c0_23, %c0_24] : memref<1x8x256xf32, #tpu.memory_space<vmem>>, vector<1x8x256xf32>
    tpu.vector_store %arg4[%c0_22, %c0_23, %c0_24], %43 {strides = array<i32>} : memref<1x8x256xf32, #tpu.memory_space<vmem>>, vector<1x8x256xf32>,
    return
  }
  func.func @transform_0(%arg0: i32) -> (i32, i32, i32, i32) {
    %c0_i32 = arith.constant 0 : i32
    %c0_i32_0 = arith.constant 0 : i32
    %c0_i32_1 = arith.constant 0 : i32
    %c0_i32_2 = arith.constant 0 : i32
    return %arg0, %c0_i32, %c0_i32_0, %c0_i32_1 : i32, i32, i32, i32
  }
  func.func @transform_1(%arg0: i32) -> (i32, i32) {
    %c0_i32 = arith.constant 0 : i32
    %c0_i32_0 = arith.constant 0 : i32
    %c0_i32_1 = arith.constant 0 : i32
    return %c0_i32, %c0_i32_0 : i32, i32
  }
  func.func @transform_2(%arg0: i32) -> (i32, i32) {
    %c0_i32 = arith.constant 0 : i32
    %c0_i32_0 = arith.constant 0 : i32
    %c0_i32_1 = arith.constant 0 : i32
    return %c0_i32, %c0_i32_0 : i32, i32
  }
  func.func @transform_3(%arg0: i32) -> (i32, i32, i32) {
    %c0_i32 = arith.constant 0 : i32
    %c0_i32_0 = arith.constant 0 : i32
    %c0_i32_1 = arith.constant 0 : i32
    return %arg0, %c0_i32, %c0_i32_0 : i32, i32, i32
  }
}

</mosaic_0001>

<bundles_post_ra>
// kernel: tpu_custom_call.1
= control target key start
LH: loop header
LB: loop body
LE: loop exit
PB: predicated region body
PF: predicated region fallthrough
CT: control target
= control target key end

     0   :  { %8 = vsyncpa [#allocation4], 0  ;;  %s5267_s0 = inlined_call_operand.vmem [shape: bf16[2,4,18,18], index: 0, kind: input, shape index: {}]   ;;  %s5268_s1 = inlined_call_operand.vmem [shape: bf16[8,36], index: 1, kind: input, shape index: {}]   ;;  %s5269_s2 = inlined_call_operand.vmem [shape: f32[8,1], index: 2, kind: input, shape index: {}]   ;;  %s5270_s3 = inlined_call_operand.hbm [shape: f32[2,8,256], index: 3, kind: output, shape index: {}]  }
   0x1   :  { %10 = vsyncpa [#allocation4 + $0x1], 0  ;;  %s3386_s12 = smov 0   ;;  %s3388_s13 = smov 0  }
   0x2   :  { %s3390_s14 = smov 0   ;;  %s3392_s15 = smov 0  }
   0x3 LB: > { %s3407_s16 = sadd.s32 4294967295, %s3351_s15   ;;  %s2993_s17 = sadd.s32 4294967294, %s3351_s15   ;;  %s3351_s15 = sphi %s3392_s15, %s5430_s15   ;;  %s3347_s14 = sphi %s3390_s14, %s5429_s14   ;;  %s3343_s13 = sphi %s3388_s13, %s5428_s13   ;;  %s3339_s12 = sphi %s3386_s12, %s5427_s12  }
   0x4   : > { %s3411_s18 = sadd.s32 1, %s3351_s15   ;;  %s91_s19 = sadd.s32 1, %s3347_s14 }
   0x5   : > { %s88_s20 = ssub.s32 %s3351_s15, %s3411_s18  ;;  %p101_p0 = scmp.ne.s32.totalorder %s3347_s14, %s3343_s13 }
   0x6   : > { %p89_p1 = scmp.eq.s32.totalorder %s88_s20, 0  ;;  %p102_p2 = scmp.eq.s32.totalorder %s3407_s16, 1 }
   0x7   : > { %p107_p3 = scmp.ne.s32.totalorder %s3343_s13, %s3339_s12  ;;  %p108_p4 = scmp.eq.s32.totalorder %s2993_s17, 1 }
   0x8   : > { %s3422_s21 = scalar_select %p89_p1, %s3347_s14, %s91_s19  }
   0x9   : > { %p3424_p5 = por %p102_p2, %p101_p0  ;;  %p3428_p6 = por %p108_p4, %p107_p3 }
   0xa   : > { %p2996_p7 = scmp.ge.s32.totalorder %s3351_s15, 1  ;;  %p140_p8 = scmp.lt.s32.totalorder %s3351_s15, 3 }
   0xc   : > { %p141_p9 = pnand %p2996_p7, %p140_p8 }
   0xe   : > { %144 = sbr.rel (%p141_p9) target bundleno = 776 (0x308), region = 32 }
  0x15   : > { %p164_p10 = scmp.lt.s32.totalorder %s3407_s16, 1  ;;  %s3353_s29 = smov 127   ;;  %vm1031_vm0 = vsmask.f32 3328  ;;  %vm1032_vm1 = vsmask.f32 7440  ;;  %v210_v28 = vlaneseq }
  0x16   : > { %v3354_v26 = vmov 1983009808   ;;  %vm3510_vm2 = vmor %vm1031_vm0, %vm1032_vm1  ;;  %vm1953_vm3 = vcmask 1042432   ;;  %vm1954_vm4 = vcmask 1046532   ;;  %s3355_s30 = smov 126   ;;  %s3357_s4 = smov 16  }
  0x17   : > { %s165_s24 = scalar_select %p164_p10, %s3407_s16, 1  ;;  %v3502_v27 = vunpack.c.l.s4 %v3354_v26  ;;  %v3522_v41 = vshrl.u32 %v210_v28, 7  ;;  %vm3556_vm5 = vmor %vm1953_vm3, %vm1954_vm4  ;;  %vm412_vm6 = vcmask 130048   ;;  %vm416_vm7 = vcmask 261120  }
  0x18   : > { %s3358_s5 = smov 32   ;;  %s3359_s6 = smov 48   ;;  %vm419_vm8 = vcmask 392192   ;;  %vm422_vm9 = vcmask 523264   ;;  %vm425_vm10 = vcmask 654336   ;;  %vm428_vm11 = vcmask 785408  }
  0x19   : > { %s3224_s25 = smul.u32 48, %s165_s24  ;;  %v209_v40 = vunpack.c.0.s8 %v3502_v27  ;;  %s3360_s7 = smov 64   ;;  %vm431_vm12 = vcmask 916480   ;;  %vm2859_vm13 = vcmask 1041408   ;;  %vm2855_vm14 = vcmask 293888  }
  0x1a   : > { %s3361_s8 = smov 80   ;;  %s3362_s9 = smov 96  }
  0x1b   : > { %s3439_s28 = scalar_lea.vmem %s5267_s0, %s3224_s25  ;;  %s3363_s10 = smov 112  }
  0x1c   : > { %v3442_v0 = vld [vmem:[%s3439_s28 + $0xc] sm:$0xf]  ;;  %v3445_v1 = vld [vmem:[%s3439_s28] sm:$0xf]  ;;  %v3452_v2 = vld [vmem:[%s3439_s28 + $0x10] sm:$0xf] }
  0x1d   : > { %468 = vrot.lane.b32.xlu1 %v3442_v0, %s3353_s29  ;;  %464 = vrot.lane.b32.xlu0 %v3445_v1, %s3353_s29  ;;  %v3455_v3 = vld [vmem:[%s3439_s28 + $0x4] sm:$0xf]  ;;  %v185_v4 = vshrl.u32 %v3445_v1, 16  ;;  %v1036_v5 = vshll.u32 %v3445_v1, 16  ;;  %v184_v6 = vpack.i.b16 %v3442_v0, %v3445_v1  ;;  %v3472_v12 = vld [vmem:[%s3439_s28 + $0x1c] sm:$0xf] }
  0x1e   : > { %v196_v7 = vpack.i.b16 %v3452_v2, %v3455_v3  ;;  %v197_v8 = vshrl.u32 %v3455_v3, 16  ;;  %v1041_v9 = vshll.u32 %v3455_v3, 16  ;;  %v3475_v13 = vld [vmem:[%s3439_s28 + $0x18] sm:$0xf]  ;;  %v198_v14 = vshrl.u32 %v3452_v2, 16  ;;  %s161_s24 = sand.u32 1, %s3343_s13  }
  0x1f   : > { %v1035_v10 = vrot.slane %v185_v4, 4  ;;  %v1038_v11 = vrot.slane %v1036_v5, 5  ;;  %v1061_v15 = vshll.u32 %v3452_v2, 16  ;;  %v3484_v16 = vld [vmem:[%s3439_s28 + $0x28] sm:$0xf]  ;;  %v186_v29 = vshrl.u32 %v3442_v0, 16 }
  0x20   : > { %v3487_v17 = vld [vmem:[%s3439_s28 + $0x8] sm:$0x1]  ;;  %v1043_v18 = vrot.slane %v1041_v9, 5  ;;  %v1046_v19 = vrot.slane %v197_v8, 4  ;;  %v3492_v21 = vld [vmem:[%s3439_s28 + $0x24] sm:$0xf] }
  0x21   : > { %470 = vrot.lane.b32.xlu1 %v3452_v2, %s3353_s29  ;;  %466 = vrot.lane.b32.xlu0 %v3455_v3, %s3353_s29  ;;  %v1039_v20 = vor.u32 %v1038_v11, %v1035_v10  ;;  %v3495_v22 = vld [vmem:[%s3439_s28 + $0x14] sm:$0x1]  ;;  %v3497_v23 = vrot.slane %v1061_v15, 5  ;;  %v1066_v24 = vrot.slane %v198_v14, 4  ;;  %v1050_v25 = vshll.u32 %v3487_v17, 16  ;;  %s2997_s25 = sshll.u32 %s161_s24, 4 }
  0x22   : > { %v1047_v30 = vor.u32 %v1046_v19, %v1043_v18  ;;  %v1070_v32 = vshll.u32 %v3495_v22, 16  ;;  %v1056_v35 = vshll.u32 %v3442_v0, 16  ;;  %v3517_v36 = vld [vmem:[%s3439_s28 + $0x20] sm:$0x1]  ;;  %v1081_v37 = vshll.u32 %v3472_v12, 16  ;;  %s3223_s26 = sshll.u32 %s3407_s16, 8 }
  0x23   : > { %v1040_v31 = vrot.slane %v1039_v20, 4  ;;  %v1067_v34 = vor.u32 %v1066_v24, %v3497_v23  ;;  %v203_v38 = vshrl.u32 %v3472_v12, 16  ;;  %v1052_v39 = vrot.slane %v1050_v25, 5  ;;  %v181_v20 = vld [vmem:[%s3439_s28 + $0x2c] sm:$0x1]  ;;  %s163_s27 = scalar_lea.vmem [#allocation3], %s2997_s25 }
  0x24   : > { %v3526_v42 = vrot.slane %v186_v29, 4  ;;  %v1048_v43 = vrot.slane %v1047_v30, 4  ;;  %v1072_v45 = vrot.slane %v1070_v32, 5  ;;  %v1090_v46 = vshll.u32 %v3517_v36, 16  ;;  %s2934_s28 = sshll.u32 %s163_s27, 4  ;;  %s3365_s16 = smov [#allocation3]   ;;  %s5227_s28 = int_to_ptr.vmem [resolvable:$true] %s2934_s28 }
  0x25   : > { %474 = vrot.lane.b32.xlu1 %v3472_v12, %s3353_s29  ;;  %472 = vrot.lane.b32.xlu0 %v3475_v13, %s3353_s29  ;;  %v3534_v44 = vsel %vm3510_vm2, %v1040_v31, %v1043_v18  ;;  %v1068_v47 = vrot.slane %v1067_v34, 4  ;;  %v1058_v48 = vrot.slane %v1056_v35, 5  ;;  %v3537_v49 = vrot.slane %v1081_v37, 5 }
  0x26   : > { %v191_v50 = vshrl.u32 %v3475_v13, 16  ;;  %v1086_v51 = vrot.slane %v203_v38, 4  ;;  %v1076_v52 = vshll.u32 %v3475_v13, 16  ;;  %v204_v53 = vshrl.u32 %v3484_v16, 16 }
  0x27   : > { %v1958_v54 = vrot.slane %v3455_v3, 5  ;;  %v1101_v55 = vshll.u32 %v3484_v16, 16  ;;  %v192_v56 = vshrl.u32 %v3492_v21, 16  ;;  %v1961_v57 = vrot.slane %v3487_v17, 5 }
  0x28   : > { %v1965_v58 = vrot.slane %v3452_v2, 5  ;;  %v1096_v59 = vshll.u32 %v3492_v21, 16  ;;  %v3089_v62 = vrot.slane %v3445_v1, 9  ;;  %v1968_v63 = vrot.slane %v3495_v22, 5 }
  0x29   : > { %478 = vrot.lane.b32.xlu1 %v3484_v16, %s3353_s29  ;;  %476 = vrot.lane.b32.xlu0 %v3492_v21, %s3353_s29  ;;  %v1960_v61 = vrot.slane %v1958_v54, 4  ;;  %v3564_v5 = vsel %vm3510_vm2, %v1048_v43, %v1052_v39  ;;  %v1059_v9 = vor.u32 %v1058_v48, %v3526_v42  ;;  %v3090_v11 = vrot.slane %v3442_v0, 9 }
  0x2a   : > { %v1967_v10 = vrot.slane %v1965_v58, 4  ;;  %v3570_v15 = vsel %vm3510_vm2, %v1068_v47, %v1072_v45  ;;  %v1075_v17 = vrot.slane %v191_v50, 4  ;;  %v1078_v18 = vrot.slane %v1076_v52, 5 }
  0x2b   : > { %v1106_v19 = vrot.slane %v204_v53, 4  ;;  %v1103_v22 = vrot.slane %v1101_v55, 5  ;;  %v1095_v24 = vrot.slane %v192_v56, 4  ;;  %v3581_v25 = vsel %vm3556_vm5, %v1960_v61, %v1961_v57 }
  0x2c   : > { %v1972_v26 = vrot.slane %v3472_v12, 5  ;;  %v1098_v28 = vrot.slane %v1096_v59, 5  ;;  %v1999_v30 = vshrl.u32 %v3581_v25, 16  ;;  %v3591_v31 = vsel %vm3556_vm5, %v3089_v62, %v1958_v54 }
  0x2d   : > { %750 = vrot.lane.b32.xlu1 %v3455_v3, %s3355_s30  ;;  %748 = vrot.lane.b32.xlu0 %v3445_v1, %s3355_s30  ;;  %v3595_v32 = vsel %vm3556_vm5, %v1967_v10, %v1968_v63  ;;  %v1087_v34 = vor.u32 %v1086_v51, %v3537_v49  ;;  %v1987_v35 = vshrl.u32 %v3591_v31, 16  ;;  %v3603_v39 = vsel %vm3556_vm5, %v3090_v11, %v1965_v58 }
  0x2e   : > { %v1998_v37 = vpack.i.b16 %v3595_v32, %v3581_v25  ;;  %v1079_v42 = vor.u32 %v1078_v18, %v1075_v17  ;;  %v1110_v43 = vshll.u32 %v181_v20, 16  ;;  %v2000_v45 = vshrl.u32 %v3595_v32, 16 }
  0x2f   : > { %v1988_v48 = vshrl.u32 %v3603_v39, 16  ;;  %v1974_v52 = vrot.slane %v1972_v26, 4  ;;  %v1975_v51 = vrot.slane %v3517_v36, 5  ;;  %v3091_v54 = vrot.slane %v3475_v13, 9 }
  0x30   : > { %v1092_v55 = vrot.slane %v1090_v46, 5  ;;  %v1107_v57 = vor.u32 %v1106_v19, %v1103_v22  ;;  %v1099_v58 = vor.u32 %v1098_v28, %v1095_v24  ;;  %v3615_v59 = vpack.i.b16 %v2000_v45, %v1999_v30 }
  0x31   : > { %754 = vrot.lane.b32.xlu1 %v3452_v2, %s3355_s30  ;;  %752 = vrot.lane.b32.xlu0 %v3442_v0, %s3355_s30  ;;  %v1060_v61 = vrot.slane %v1059_v9, 4  ;;  %v1088_v62 = vrot.slane %v1087_v34, 4  ;;  %v3617_v63 = vpack.i.b16 %v1988_v48, %v1987_v35  ;;  %v1979_v10 = vrot.slane %v3484_v16, 5 }
  0x32   : > { %5303 = vst [vmem:[#allocation6_spill] sm:$0xff] %v3615_v59  ;;  %v1112_v36 = vrot.slane %v1110_v43, 5  ;;  %v3622_v11 = vsel %vm3556_vm5, %v3091_v54, %v1972_v26  ;;  %v1982_v17 = vrot.slane %v181_v20, 5  ;;  %v3092_v18 = vrot.slane %v3492_v21, 9 }
  0x33   : > { %5304 = vst [vmem:[#allocation7_spill] sm:$0xff] %v3617_v63  ;;  %v1080_v47 = vrot.slane %v1079_v42, 4  ;;  %v3627_v46 = vsel %vm3556_vm5, %v1974_v52, %v1975_v51  ;;  %v1993_v9 = vshrl.u32 %v3622_v11, 16  ;;  %v1981_v19 = vrot.slane %v1979_v10, 4 }
  0x34   : > { %v1108_v24 = vrot.slane %v1107_v57, 4  ;;  %v1100_v26 = vrot.slane %v1099_v58, 4  ;;  %v2005_v20 = vshrl.u32 %v3627_v46, 16  ;;  %v3637_v28 = vsel %vm3556_vm5, %v3092_v18, %v1979_v10 }
  0x35   : > { %758 = vrot.lane.b32.xlu1 %v3472_v12, %s3355_s30  ;;  %756 = vrot.lane.b32.xlu0 %v3475_v13, %s3355_s30  ;;  %v3642_v30 = vsel %vm3510_vm2, %v1060_v61, %v3497_v23  ;;  %v3646_v34 = vsel %vm3556_vm5, %v1981_v19, %v1982_v17  ;;  %v1994_v42 = vshrl.u32 %v3637_v28, 16  ;;  %v1128_v43 = vpack.i.b16 %v3570_v15, %v3564_v5 }
  0x36   : > { %v2004_v45 = vpack.i.b16 %v3646_v34, %v3627_v46  ;;  %v2006_v48 = vshrl.u32 %v3646_v34, 16  ;;  %v1116_v23 = vpack.i.b16 %v3642_v30, %v3534_v44  ;;  %v1093_v60 = vsel %vm3510_vm2, %v1088_v62, %v1092_v55 }
  0x37   : > { %v1084_v52 = vsel %vm3510_vm2, %v1080_v47, %v3537_v49  ;;  %v3663_v51 = vpack.i.b16 %v1994_v42, %v1993_v9  ;;  %v1113_v54 = vsel %vm3510_vm2, %v1108_v24, %v1112_v36  ;;  %v1104_v57 = vsel %vm3510_vm2, %v1100_v26, %v1103_v22 }
  0x38   : > { %v3673_v58 = vpack.i.b16 %v2006_v48, %v2005_v20  ;;  %v3678_v49 = vsub.s32 %v209_v40, %v3522_v41  ;;  %v1134_v47 = vpack.i.b16 %v1113_v54, %v1093_v60  ;;  %v1122_v55 = vpack.i.b16 %v1104_v57, %v1084_v52 }
  0x39   : > { %762 = vrot.lane.b32.xlu1 %v3484_v16, %s3355_s30  ;;  %760 = vrot.lane.b32.xlu0 %v3492_v21, %s3355_s30  ;;  %5305 = vst [vmem:[#allocation8_spill] sm:$0xff] %v3663_v51  ;;  %v1117_v61 = vshrl.u32 %v3534_v44, 16  ;;  %v199_v62 = vpack.i.b16 %v198_v14, %v197_v8  ;;  %v1129_v10 = vshrl.u32 %v3564_v5, 16  ;;  %v1130_v33 = vshrl.u32 %v3570_v15, 16 }
  0x3a   : > { %5306 = vst [vmem:[#allocation9_spill] sm:$0xff] %v3673_v58  ;;  %v3688_v22 = vrot.slane %v1128_v43, %v3678_v49  ;;  %v3694_v27 = vpack.i.b16 %v186_v29, %v185_v4  ;;  %v1118_v40 = vshrl.u32 %v3642_v30, 16  ;;  %v3698_v36 = vrot.slane %v1116_v23, %v3678_v49 }
  0x3b   : > { %v1135_v17 = vshrl.u32 %v1093_v60, 16  ;;  %v1123_v8 = vshrl.u32 %v1084_v52, 16  ;;  %v1136_v14 = vshrl.u32 %v1113_v54, 16  ;;  %v3703_v18 = vrot.slane %v1134_v47, %v3678_v49 }
  0x3c   : > { %v3706_v9 = vrot.slane %v1122_v55, %v3678_v49  ;;  %v202_v4 = vpack.i.b16 %v3484_v16, %v3472_v12  ;;  %v1124_v29 = vshrl.u32 %v1104_v57, 16  ;;  %v3714_v19 = vrot.slane %v196_v7, %v3678_v49 }
  0x3d   : > { %1667 = vrot.lane.b32.xlu1 %v3564_v5, %s3355_s30  ;;  %1665 = vrot.lane.b32.xlu0 %v3534_v44, %s3355_s30  ;;  %v190_v24 = vpack.i.b16 %v3492_v21, %v3475_v13  ;;  %v3722_v26 = vrot.slane %v184_v6, %v3678_v49  ;;  %v1131_v7 = vpack.i.b16 %v1130_v33, %v1129_v10 }
  0x3e   : > { %v3725_v20 = vrot.slane %v202_v4, %v3678_v49  ;;  %v1119_v1 = vpack.i.b16 %v1118_v40, %v1117_v61  ;;  %v1137_v6 = vpack.i.b16 %v1136_v14, %v1135_v17  ;;  %v1125_v43 = vpack.i.b16 %v1124_v29, %v1123_v8 }
  0x3f   : > { %v3734_v3 = vrot.slane %v190_v24, %v3678_v49  ;;  %v3745_v23 = vrot.slane %v1131_v7, %v3678_v49  ;;  %v3356_v8 = vmov 1934713408   ;;  %v193_v12 = vpack.i.b16 %v192_v56, %v191_v50 }
  0x40   : > { %v290_v0 = vcombine.low %v3714_v19, %v3725_v20  ;;  %v3748_v47 = vrot.slane %v1137_v6, %v3678_v49  ;;  %v3751_v55 = vrot.slane %v1119_v1, %v3678_v49  ;;  %v3754_v61 = vrot.slane %v1125_v43, %v3678_v49 }
  0x41   : > { %1671 = vrot.lane.b32.xlu1 %v3570_v15, %s3355_s30  ;;  %1669 = vrot.lane.b32.xlu0 %v3642_v30, %s3355_s30  ;;  %v222_v48 = vcombine.low %v3722_v26, %v3734_v3  ;;  %v225_v14 = vunpack.c.l.s4 %v3356_v8  ;;  %v3821_v21 = vrot.slane %v3694_v27, %v3678_v49  ;;  %v1222_v56 = vcombine.low %v3688_v22, %v3703_v18 }
  0x45   : > { %1675 = vrot.lane.b32.xlu1 %v1093_v60, %s3355_s30  ;;  %1673 = vrot.lane.b32.xlu0 %v1084_v52, %s3355_s30 }
  0x49   : > { %1679 = vrot.lane.b32.xlu1 %v1113_v54, %s3355_s30  ;;  %1677 = vrot.lane.b32.xlu0 %v1104_v57, %s3355_s30 }
  0x4d   : > { %2253 = vrot.lane.b32.xlu1 %v3581_v25, %s3353_s29  ;;  %2251 = vrot.lane.b32.xlu0 %v3591_v31, %s3353_s29 }
  0x51   : > { %2257 = vrot.lane.b32.xlu1 %v3595_v32, %s3353_s29  ;;  %2255 = vrot.lane.b32.xlu0 %v3603_v39, %s3353_s29 }
  0x55   : > { %2261 = vrot.lane.b32.xlu1 %v3627_v46, %s3353_s29  ;;  %2259 = vrot.lane.b32.xlu0 %v3622_v11, %s3353_s29 }
  0x59   : > { %2265 = vrot.lane.b32.xlu1 %v3646_v34, %s3353_s29  ;;  %2263 = vrot.lane.b32.xlu0 %v3637_v28, %s3353_s29 }
  0x5d   : > { %1384 = vrot.lane.b32.xlu1 %v3564_v5, %s3353_s29  ;;  %1382 = vrot.lane.b32.xlu0 %v3534_v44, %s3353_s29  ;;  %v205_v44 = vpack.i.b16 %v204_v53, %v203_v38  ;;  %v226_v5 = vunpack.c.0.s8 %v225_v14  ;;  %v1256_v38 = vcombine.low %v3745_v23, %v3748_v47  ;;  %v1188_v53 = vcombine.low %v3751_v55, %v3754_v61 }
  0x5f   : > { %v3807_v16 = vsub.s32 %v226_v5, %v3522_v41  ;;  %v3824_v41 = vrot.slane %v193_v12, %v3678_v49 }
  0x61   : > { %1388 = vrot.lane.b32.xlu1 %v3570_v15, %s3353_s29  ;;  %1386 = vrot.lane.b32.xlu0 %v3642_v30, %s3353_s29  ;;  %v3797_v15 = vrot.slane %v199_v62, %v3678_v49  ;;  %v3800_v30 = vrot.slane %v205_v44, %v3678_v49  ;;  %v1264_v50 = vrot.slane %v1256_v38, %v3807_v16 }
  0x62   : > { %v3839_v62 = vrot.slane %v1222_v56, %v3807_v16  ;;  %v256_v24 = vcombine.low %v3821_v21, %v3824_v41  ;;  %v3876_v12 = vrot.slane %v290_v0, %v3807_v16  ;;  %v3882_v38 = vrot.slane %v222_v48, %v3807_v16 }
  0x63   : > { %v324_v29 = vcombine.low %v3797_v15, %v3800_v30  ;;  %v3180_v44 = vcombine.high %v1264_v50, %v1264_v50 }
  0x64   : > { %5307 = vst [vmem:[#allocation10_spill] sm:$0xff] %v3839_v62  ;;  %v3179_v7 = vcombine.high %v3839_v62, %v3839_v62  ;;  %v3862_v43 = vrot.slane %v256_v24, %v3807_v16  ;;  %5309 = vst [vmem:[#allocation12_spill] sm:$0xff] %v3876_v12 }
  0x65   : > { %1392 = vrot.lane.b32.xlu1 %v1093_v60, %s3353_s29  ;;  %1390 = vrot.lane.b32.xlu0 %v1084_v52, %s3353_s29  ;;  %v1154_v60 = vcombine.low %v3698_v36, %v3706_v9  ;;  %v1196_v52 = vrot.slane %v1188_v53, %v3807_v16  ;;  %v3859_v6 = vrot.slane %v324_v29, %v3807_v16 }
  0x66   : > { %v2999_v14 = vcombine.low %v3862_v43, %v3862_v43  ;;  %5310 = vst [vmem:[#allocation13_spill] sm:$0xff] %v3882_v38  ;;  %v3155_v53 = vcombine.high %v3876_v12, %v3876_v12 }
  0x67   : > { %v3842_v27 = vrot.slane %v1154_v60, %v3807_v16  ;;  %v3044_v4 = vcombine.low %v1196_v52, %v1196_v52  ;;  %v3006_v8 = vcombine.low %v3859_v6, %v3859_v6  ;;  %v3176_v5 = vcombine.high %v1196_v52, %v1196_v52 }
  0x69   : > { %1396 = vrot.lane.b32.xlu1 %v1113_v54, %s3353_s29  ;;  %1394 = vrot.lane.b32.xlu0 %v1104_v57, %s3353_s29  ;;  %v3051_v57 = vcombine.low %v1264_v50, %v1264_v50  ;;  %5308 = vst [vmem:[#allocation11_spill] sm:$0xff] %v3842_v27  ;;  %v3175_v1 = vcombine.high %v3842_v27, %v3842_v27 }
  0x6a   : > { %v3151_v50 = vcombine.high %v3882_v38, %v3882_v38  ;;  %v5321_v27 = vcombine.high %v3698_v36, %v3706_v9 }
  0x6d   : > { %2537 = vrot.lane.b32.xlu1 %v3581_v25, %s3355_s30  ;;  %2535 = vrot.lane.b32.xlu0 %v3591_v31, %s3355_s30 }
  0x71   : > { %2541 = vrot.lane.b32.xlu1 %v3595_v32, %s3355_s30  ;;  %2539 = vrot.lane.b32.xlu0 %v3603_v39, %s3355_s30 }
  0x75   : > { %2545 = vrot.lane.b32.xlu1 %v3627_v46, %s3355_s30  ;;  %2543 = vrot.lane.b32.xlu0 %v3622_v11, %s3355_s30 }
  0x79   : > { %2549 = vrot.lane.b32.xlu1 %v3646_v34, %s3355_s30  ;;  %2547 = vrot.lane.b32.xlu0 %v3637_v28, %s3355_s30 }
  0x7d   : > { %1312 = vrot.lane.b32.xlu1 %v3051_v57, %s3357_s4  ;;  %1277 = vrot.lane.b32.xlu0 %v3044_v4, %s3357_s4 }
  0x81   : > { %1317 = vrot.lane.b32.xlu1 %v3179_v7, %s3358_s5  ;;  %1282 = vrot.lane.b32.xlu0 %v3175_v1, %s3358_s5 }
  0x85   : > { %380 = vrot.lane.b32.xlu1 %v3006_v8, %s3357_s4  ;;  %345 = vrot.lane.b32.xlu0 %v2999_v14, %s3357_s4 }
  0x89   : > { %1322 = vrot.lane.b32.xlu1 %v3180_v44, %s3359_s6  ;;  %1287 = vrot.lane.b32.xlu0 %v3176_v5, %s3359_s6 }
  0x8d   : > { %385 = vrot.lane.b32.xlu1 %v3155_v53, %s3358_s5  ;;  %350 = vrot.lane.b32.xlu0 %v3151_v50, %s3358_s5 }
  0x8f   : > { %v469_v0 = vpop.permute.xlu1 %468  ;;  %v465_v56 = vpop.permute.xlu0 %464 }
  0x90   : > { %v482_v4 = vpack.i.b16 %v469_v0, %v465_v56  ;;  %v484_v1 = vshrl.u32 %v469_v0, 16  ;;  %v483_v8 = vshrl.u32 %v465_v56, 16 }
  0x92   : > { %v511_v40 = vrot.slane %v482_v4, %v3678_v49  ;;  %v485_v56 = vpack.i.b16 %v484_v1, %v483_v8 }
  0x93   : > { %v471_v60 = vpop.permute.xlu1 %470  ;;  %v467_v48 = vpop.permute.xlu0 %466 }
  0x94   : > { %v496_v29 = vshrl.u32 %v471_v60, 16  ;;  %v494_v24 = vpack.i.b16 %v471_v60, %v467_v48  ;;  %v495_v7 = vshrl.u32 %v467_v48, 16 }
  0x96   : > { %v497_v33 = vpack.i.b16 %v496_v29, %v495_v7  ;;  %v579_v10 = vrot.slane %v494_v24, %v3678_v49  ;;  %v3916_v7 = vrot.slane %v485_v56, %v3678_v49  ;;  %v5315_v56 = vpack.i.b16 %v3637_v28, %v3622_v11 }
  0x97   : > { %v475_v52 = vpop.permute.xlu1 %474  ;;  %v473_v57 = vpop.permute.xlu0 %472 }
  0x98   : > { %v501_v14 = vshrl.u32 %v475_v52, 16  ;;  %v489_v44 = vshrl.u32 %v473_v57, 16  ;;  %v3954_v25 = vrot.slane %v5315_v56, %v3678_v49 }
  0x9a   : > { %5316 = vst [vmem:[#allocation17_spill] sm:$0xff] %v3954_v25 }
  0x9b   : > { %v479_v5 = vpop.permute.xlu1 %478  ;;  %v477_v54 = vpop.permute.xlu0 %476 }
  0x9c   : > { %v500_v13 = vpack.i.b16 %v479_v5, %v475_v52  ;;  %v502_v53 = vshrl.u32 %v479_v5, 16  ;;  %v488_v17 = vpack.i.b16 %v477_v54, %v473_v57  ;;  %v490_v50 = vshrl.u32 %v477_v54, 16 }
  0x9e   : > { %v503_v2 = vpack.i.b16 %v502_v53, %v501_v14  ;;  %v587_v42 = vrot.slane %v500_v13, %v3678_v49  ;;  %v491_v60 = vpack.i.b16 %v490_v50, %v489_v44  ;;  %v519_v0 = vrot.slane %v488_v17, %v3678_v49 }
  0x9f   : > { %v3896_v48 = vpop.permute.xlu1 %750  ;;  %v3898_v35 = vpop.permute.xlu0 %748  ;;  %v3907_v13 = vrot.slane %v497_v33, %v3678_v49  ;;  %v3936_v44 = vrot.slane %v1998_v37, %v3678_v49  ;;  %v5313_v50 = vpack.i.b16 %v3603_v39, %v3591_v31 }
  0xa0   : > { %v588_v52 = vcombine.low %v579_v10, %v587_v42  ;;  %v589_v5 = vcombine.high %v579_v10, %v587_v42  ;;  %v3901_v54 = vrot.slane %v503_v2, %v3678_v49  ;;  %v520_v57 = vcombine.low %v511_v40, %v519_v0 }
  0xa1   : > { %v521_v4 = vcombine.high %v511_v40, %v519_v0  ;;  %v3904_v29 = vrot.slane %v491_v60, %v3678_v49  ;;  %v3942_v60 = vrot.slane %v5313_v50, %v3678_v49  ;;  %v3948_v0 = vrot.slane %v2004_v45, %v3678_v49 }
  0xa2   : > { %v3910_v17 = vrot.slane %v588_v52, %v3807_v16  ;;  %v3913_v24 = vrot.slane %v520_v57, %v3807_v16  ;;  %v3919_v10 = vrot.slane %v589_v5, %v3807_v16  ;;  %v622_v40 = vcombine.low %v3907_v13, %v3901_v54 }
  0xa3   : > { %v755_v42 = vpop.permute.xlu1 %754  ;;  %v753_v2 = vpop.permute.xlu0 %752  ;;  %v3928_v8 = vrot.slane %v521_v4, %v3807_v16  ;;  %v554_v14 = vcombine.low %v3916_v7, %v3904_v29  ;;  %5314 = vst [vmem:[#allocation16_spill] sm:$0xff] %v3942_v60  ;;  %v779_v37 = vshrl.u32 %v3896_v48, 16  ;;  %v767_v28 = vshrl.u32 %v3898_v35, 16 }
  0xa4   : > { %5311 = vst [vmem:[#allocation14_spill] sm:$0xff] %v3910_v17  ;;  %5312 = vst [vmem:[#allocation15_spill] sm:$0xff] %v3913_v24  ;;  %v3163_v33 = vcombine.high %v3910_v17, %v3910_v17  ;;  %v3159_v1 = vcombine.high %v3913_v24, %v3913_v24  ;;  %v780_v53 = vshrl.u32 %v755_v42, 16  ;;  %v768_v39 = vshrl.u32 %v753_v2, 16 }
  0xa5   : > { %v3024_v46 = vcombine.low %v3919_v10, %v3919_v10  ;;  %v3017_v34 = vcombine.low %v3928_v8, %v3928_v8  ;;  %v630_v45 = vrot.slane %v622_v40, %v3807_v16  ;;  %v562_v11 = vrot.slane %v554_v14, %v3807_v16 }
  0xa6   : > { %683 = vrot.lane.b32.xlu1 %v3163_v33, %s3358_s5  ;;  %648 = vrot.lane.b32.xlu0 %v3159_v1, %s3358_s5  ;;  %v778_v52 = vpack.i.b16 %v755_v42, %v3896_v48  ;;  %v781_v5 = vpack.i.b16 %v780_v53, %v779_v37  ;;  %v766_v57 = vpack.i.b16 %v753_v2, %v3898_v35 }
  0xa7   : > { %v759_v32 = vpop.permute.xlu1 %758  ;;  %v757_v31 = vpop.permute.xlu0 %756  ;;  %v769_v35 = vpack.i.b16 %v768_v39, %v767_v28  ;;  %v3021_v2 = vcombine.low %v630_v45, %v630_v45  ;;  %v3014_v37 = vcombine.low %v562_v11, %v562_v11  ;;  %v623_v63 = vcombine.high %v3907_v13, %v3901_v54 }
  0xa8   : > { %v785_v4 = vshrl.u32 %v759_v32, 16  ;;  %v773_v33 = vshrl.u32 %v757_v31, 16  ;;  %v3990_v39 = vrot.slane %v781_v5, %v3678_v49  ;;  %v3993_v28 = vrot.slane %v766_v57, %v3678_v49 }
  0xa9   : > { %v3152_v54 = vcombine.high %v3862_v43, %v3862_v43  ;;  %v5326_v43 = vcombine.high %v3745_v23, %v3748_v47  ;;  %v5328_v23 = vcombine.high %v3751_v55, %v3754_v61 }
  0xaa   : > { %693 = vrot.lane.b32.xlu1 %v3024_v46, %s3360_s7  ;;  %658 = vrot.lane.b32.xlu0 %v3017_v34, %s3360_s7 }
  0xab   : > { %v763_v1 = vpop.permute.xlu1 %762  ;;  %v761_v50 = vpop.permute.xlu0 %760  ;;  %v4143_v47 = vrot.slane %v5328_v23, %v3807_v16 }
  0xac   : > { %v784_v56 = vpack.i.b16 %v763_v1, %v759_v32  ;;  %v786_v48 = vshrl.u32 %v763_v1, 16  ;;  %v772_v42 = vpack.i.b16 %v761_v50, %v757_v31  ;;  %v774_v53 = vshrl.u32 %v761_v50, 16 }
  0xad   : > { %v3987_v31 = vrot.slane %v778_v52, %v3678_v49  ;;  %v3164_v50 = vcombine.high %v630_v45, %v630_v45 }
  0xae   : > { %v787_v38 = vpack.i.b16 %v786_v48, %v785_v4  ;;  %v3975_v46 = vrot.slane %v784_v56, %v3678_v49  ;;  %v775_v34 = vpack.i.b16 %v774_v53, %v773_v33  ;;  %v3978_v12 = vrot.slane %v772_v42, %v3678_v49  ;;  %678 = vrot.lane.b32.xlu1 %v3021_v2, %s3357_s4 }
  0xaf   : > { %643 = vrot.lane.b32.xlu0 %v3014_v37, %s3357_s4  ;;  %v3982_v14 = vpop.permute.xlu1 %1667  ;;  %v3984_v32 = vpop.permute.xlu0 %1665  ;;  %v3999_v33 = vrot.slane %v769_v35, %v3678_v49  ;;  %v3160_v56 = vcombine.high %v562_v11, %v562_v11  ;;  %v5320_v48 = vcombine.high %v3688_v22, %v3703_v18 }
  0xb0   : > { %v3996_v4 = vrot.slane %v787_v38, %v3678_v49  ;;  %v4002_v1 = vrot.slane %v775_v34, %v3678_v49  ;;  %v872_v52 = vcombine.low %v3987_v31, %v3975_v46  ;;  %v804_v38 = vcombine.low %v3993_v28, %v3978_v12 }
  0xb1   : > { %v4051_v5 = vrot.slane %v5320_v48, %v3807_v16  ;;  %v1684_v62 = vshrl.u32 %v3984_v32, 16 }
  0xb2   : > { %5317 = vst [vmem:[#allocation18_spill] sm:$0xff] %v4002_v1  ;;  %v906_v57 = vcombine.low %v3990_v39, %v3996_v4  ;;  %688 = vrot.lane.b32.xlu1 %v3164_v50, %s3359_s6  ;;  %v838_v42 = vcombine.low %v3999_v33, %v4002_v1  ;;  %v4029_v2 = vrot.slane %v872_v52, %v3807_v16 }
  0xb3   : > { %653 = vrot.lane.b32.xlu0 %v3160_v56, %s3359_s6  ;;  %v4016_v45 = vpop.permute.xlu1 %1671  ;;  %v4018_v11 = vpop.permute.xlu0 %1669 }
  0xb4   : > { %v4023_v53 = vrot.slane %v906_v57, %v3807_v16  ;;  %v4026_v35 = vrot.slane %v838_v42, %v3807_v16  ;;  %5318 = vst [vmem:[#allocation19_spill] sm:$0xff] %v4029_v2  ;;  %v1697_v37 = vshrl.u32 %v4016_v45, 16  ;;  %v4041_v57 = vrot.slane %v804_v38, %v3807_v16 }
  0xb5   : > { %v1696_v42 = vshrl.u32 %v3982_v14, 16  ;;  %v1685_v52 = vshrl.u32 %v4018_v11, 16  ;;  %v4057_v38 = vrot.slane %v5321_v27, %v3807_v16 }
  0xb6   : > { %v3036_v56 = vcombine.low %v4023_v53, %v4023_v53  ;;  %v3029_v40 = vcombine.low %v4026_v35, %v4026_v35  ;;  %5319 = vst [vmem:[#allocation20_spill] sm:$0xff] %v4041_v57  ;;  %v3167_v22 = vcombine.high %v4041_v57, %v4041_v57 }
  0xb7   : > { %v4032_v34 = vpop.permute.xlu1 %1675  ;;  %v4034_v50 = vpop.permute.xlu0 %1673  ;;  %v1698_v24 = vpack.i.b16 %v1697_v37, %v1696_v42  ;;  %v1686_v27 = vpack.i.b16 %v1685_v52, %v1684_v62  ;;  %v3054_v37 = vcombine.low %v4051_v5, %v4051_v5  ;;  %v3047_v42 = vcombine.low %v4057_v38, %v4057_v38 }
  0xb8   : > { %962 = vrot.lane.b32.xlu1 %v3036_v56, %s3357_s4  ;;  %927 = vrot.lane.b32.xlu0 %v3029_v40, %s3357_s4  ;;  %v3171_v40 = vcombine.high %v4029_v2, %v4029_v2  ;;  %v1702_v18 = vshrl.u32 %v4032_v34, 16  ;;  %v1690_v48 = vshrl.u32 %v4034_v50, 16  ;;  %v555_v62 = vcombine.high %v3916_v7, %v3904_v29 }
  0xb9   : > { %v4087_v52 = vrot.slane %v1698_v24, %v3678_v49  ;;  %v4113_v7 = vrot.slane %v623_v63, %v3807_v16 }
  0xbb   : > { %v4060_v17 = vpop.permute.xlu1 %1679  ;;  %v4062_v56 = vpop.permute.xlu0 %1677  ;;  %5322 = vst [vmem:[#allocation21_spill] sm:$0xff] %v4087_v52  ;;  %v3025_v63 = vcombine.low %v4113_v7, %v4113_v7 }
  0xbc   : > { %v1703_v36 = vshrl.u32 %v4060_v17, 16  ;;  %v1691_v9 = vshrl.u32 %v4062_v56, 16  ;;  %967 = vrot.lane.b32.xlu1 %v3171_v40, %s3358_s5  ;;  %932 = vrot.lane.b32.xlu0 %v3167_v22, %s3358_s5  ;;  %v3156_v22 = vcombine.high %v3859_v6, %v3859_v6 }
  0xbe   : > { %v1704_v57 = vpack.i.b16 %v1703_v36, %v1702_v18  ;;  %v1692_v2 = vpack.i.b16 %v1691_v9, %v1690_v48  ;;  %v4095_v18 = vrot.slane %v1686_v27, %v3678_v49 }
  0xbf   : > { %v4078_v58 = vpop.permute.xlu1 %2253  ;;  %v4080_v51 = vpop.permute.xlu0 %2251 }
  0xc0   : > { %v4090_v40 = vrot.slane %v1704_v57, %v3678_v49  ;;  %5324 = vst [vmem:[#allocation23_spill] sm:$0xff] %v4095_v18  ;;  %v4098_v48 = vrot.slane %v1692_v2, %v3678_v49  ;;  %1327 = vrot.lane.b32.xlu1 %v3054_v37, %s3360_s7  ;;  %1292 = vrot.lane.b32.xlu0 %v3047_v42, %s3360_s7  ;;  %v2282_v42 = vshrl.u32 %v4078_v58, 16  ;;  %v2270_v13 = vshrl.u32 %v4080_v51, 16 }
  0xc1   : > { %v4116_v2 = vrot.slane %v555_v62, %v3807_v16  ;;  %v4124_v57 = vrot.slane %v5326_v43, %v3807_v16 }
  0xc2   : > { %5323 = vst [vmem:[#allocation22_spill] sm:$0xff] %v4090_v40  ;;  %5325 = vst [vmem:[#allocation24_spill] sm:$0xff] %v4098_v48  ;;  %v1823_v55 = vcombine.low %v4087_v52, %v4090_v40  ;;  %v1755_v61 = vcombine.low %v4095_v18, %v4098_v48 }
  0xc3   : > { %v4108_v6 = vpop.permute.xlu1 %2257  ;;  %v4110_v24 = vpop.permute.xlu0 %2255  ;;  %5327 = vst [vmem:[#allocation25_spill] sm:$0xff] %v4124_v57  ;;  %v3018_v37 = vcombine.low %v4116_v2, %v4116_v2  ;;  %v3055_v43 = vcombine.low %v4124_v57, %v4124_v57 }
  0xc4   : > { %390 = vrot.lane.b32.xlu1 %v3156_v22, %s3359_s6  ;;  %355 = vrot.lane.b32.xlu0 %v3152_v54, %s3359_s6  ;;  %v2283_v36 = vshrl.u32 %v4108_v6, 16  ;;  %v2271_v62 = vshrl.u32 %v4110_v24, 16  ;;  %v3172_v22 = vcombine.high %v4023_v53, %v4023_v53  ;;  %v3168_v54 = vcombine.high %v4026_v35, %v4026_v35 }
  0xc5   : > { %v4171_v40 = vrot.slane %v1823_v55, %v3807_v16  ;;  %v4174_v52 = vrot.slane %v1755_v61, %v3807_v16 }
  0xc6   : > { %v2272_v59 = vpack.i.b16 %v2271_v62, %v2270_v13 }
  0xc7   : > { %v4127_v9 = vpop.permute.xlu1 %2261  ;;  %v4129_v27 = vpop.permute.xlu0 %2259 }
  0xc8   : > { %698 = vrot.lane.b32.xlu1 %v3025_v63, %s3361_s8  ;;  %663 = vrot.lane.b32.xlu0 %v3018_v37, %s3361_s8  ;;  %v2284_v63 = vpack.i.b16 %v2283_v36, %v2282_v42  ;;  %v2288_v53 = vshrl.u32 %v4127_v9, 16  ;;  %v2276_v35 = vshrl.u32 %v4129_v27, 16  ;;  %v3048_v36 = vcombine.low %v4143_v47, %v4143_v47 }
  0xcb   : > { %v4152_v29 = vpop.permute.xlu1 %2265  ;;  %v4154_v37 = vpop.permute.xlu0 %2263 }
  0xcc   : > { %v2289_v23 = vshrl.u32 %v4152_v29, 16  ;;  %v2277_v57 = vshrl.u32 %v4154_v37, 16  ;;  %972 = vrot.lane.b32.xlu1 %v3172_v22, %s3359_s6  ;;  %937 = vrot.lane.b32.xlu0 %v3168_v54, %s3359_s6  ;;  %v4183_v22 = vrot.slane %v2284_v63, %v3678_v49 }
  0xce   : > { %v2290_v48 = vpack.i.b16 %v2289_v23, %v2288_v53  ;;  %v2278_v18 = vpack.i.b16 %v2277_v57, %v2276_v35  ;;  %5329 = vst [vmem:[#allocation26_spill] sm:$0xff] %v4183_v22  ;;  %v4189_v57 = vrot.slane %v2272_v59, %v3678_v49  ;;  %v3081_v59 = vcombine.low %v4171_v40, %v4171_v40 }
  0xcf   : > { %v4176_v1 = vpop.permute.xlu1 %1384  ;;  %v4178_v13 = vpop.permute.xlu0 %1382 }
  0xd0   : > { %v4186_v54 = vrot.slane %v2290_v48, %v3678_v49  ;;  %5331 = vst [vmem:[#allocation28_spill] sm:$0xff] %v4189_v57  ;;  %v4192_v55 = vrot.slane %v2278_v18, %v3678_v49  ;;  %1332 = vrot.lane.b32.xlu1 %v3055_v43, %s3361_s8  ;;  %1297 = vrot.lane.b32.xlu0 %v3048_v36, %s3361_s8 }
  0xd1   : > { %v3074_v18 = vcombine.low %v4174_v52, %v4174_v52  ;;  %v5333_v36 = vcombine.high %v3714_v19, %v3725_v20  ;;  %v5334_v48 = vcombine.high %v3722_v26, %v3734_v3  ;;  %v1413_v19 = vshrl.u32 %v4176_v1, 16 }
  0xd2   : > { %5330 = vst [vmem:[#allocation27_spill] sm:$0xff] %v4186_v54  ;;  %5332 = vst [vmem:[#allocation29_spill] sm:$0xff] %v4192_v55  ;;  %v2409_v63 = vcombine.low %v4183_v22, %v4186_v54  ;;  %v2341_v43 = vcombine.low %v4189_v57, %v4192_v55  ;;  %v873_v3 = vcombine.high %v3987_v31, %v3975_v46 }
  0xd3   : > { %v4208_v53 = vpop.permute.xlu1 %1388  ;;  %v4210_v35 = vpop.permute.xlu0 %1386  ;;  %v4219_v62 = vrot.slane %v5333_v36, %v3807_v16  ;;  %v4230_v61 = vrot.slane %v5334_v48, %v3807_v16  ;;  %v805_v48 = vcombine.high %v3993_v28, %v3978_v12  ;;  %v1701_v54 = vpack.i.b16 %v4060_v17, %v4032_v34 }
  0xd4   : > { %v4213_v23 = vrot.slane %v2409_v63, %v3807_v16  ;;  %1879 = vrot.lane.b32.xlu1 %v3081_v59, %s3357_s4  ;;  %1844 = vrot.lane.b32.xlu0 %v3074_v18, %s3357_s4  ;;  %v4224_v42 = vrot.slane %v2341_v43, %v3807_v16  ;;  %v1414_v20 = vshrl.u32 %v4208_v53, 16  ;;  %v1401_v18 = vshrl.u32 %v4178_v13, 16 }
  0xd5   : > { %v1402_v43 = vshrl.u32 %v4210_v35, 16  ;;  %v3009_v26 = vcombine.low %v4219_v62, %v4219_v62  ;;  %v3002_v57 = vcombine.low %v4230_v61, %v4230_v61  ;;  %v1689_v46 = vpack.i.b16 %v4062_v56, %v4034_v50 }
  0xd6   : > { %v3115_v63 = vcombine.low %v4213_v23, %v4213_v23  ;;  %v3108_v59 = vcombine.low %v4224_v42, %v4224_v42  ;;  %v1415_v22 = vpack.i.b16 %v1414_v20, %v1413_v19  ;;  %v3165_v12 = vcombine.high %v3919_v10, %v3919_v10 }
  0xd7   : > { %v4240_v36 = vpop.permute.xlu1 %1392  ;;  %v4242_v55 = vpop.permute.xlu0 %1390  ;;  %v1403_v31 = vpack.i.b16 %v1402_v43, %v1401_v18  ;;  %v1683_v17 = vpack.i.b16 %v4018_v11, %v3984_v32  ;;  %v3161_v10 = vcombine.high %v3928_v8, %v3928_v8  ;;  %v4277_v50 = vrot.slane %v873_v3, %v3807_v16 }
  0xd8   : > { %2465 = vrot.lane.b32.xlu1 %v3115_v63, %s3357_s4  ;;  %2430 = vrot.lane.b32.xlu0 %v3108_v59, %s3357_s4  ;;  %v1419_v25 = vshrl.u32 %v4240_v36, 16  ;;  %v1407_v60 = vshrl.u32 %v4242_v55, 16  ;;  %v1695_v59 = vpack.i.b16 %v4016_v45, %v3982_v14  ;;  %v4280_v56 = vrot.slane %v805_v48, %v3807_v16 }
  0xd9   : > { %v4283_v14 = vrot.slane %v1701_v54, %v3678_v49  ;;  %v4286_v32 = vrot.slane %v1415_v22, %v3678_v49  ;;  %v4289_v20 = vrot.slane %v1689_v46, %v3678_v49  ;;  %v2287_v8 = vpack.i.b16 %v4152_v29, %v4127_v9 }
  0xda   : > { %v4296_v18 = vrot.slane %v1403_v31, %v3678_v49  ;;  %v4299_v54 = vrot.slane %v1695_v59, %v3678_v49  ;;  %v4302_v22 = vrot.slane %v1683_v17, %v3678_v49  ;;  %v2269_v29 = vpack.i.b16 %v4110_v24, %v4080_v51 }
  0xdb   : > { %v4262_v28 = vpop.permute.xlu1 %1396  ;;  %v4264_v63 = vpop.permute.xlu0 %1394  ;;  %v4327_v24 = vrot.slane %v2287_v8, %v3678_v49  ;;  %v3181_v3 = vcombine.high %v4051_v5, %v4051_v5  ;;  %v3177_v31 = vcombine.high %v4057_v38, %v4057_v38  ;;  %v5335_v8 = vcombine.high %v3797_v15, %v3800_v30 }
  0xdc   : > { %v1420_v34 = vshrl.u32 %v4262_v28, 16  ;;  %v1408_v19 = vshrl.u32 %v4264_v63, 16  ;;  %395 = vrot.lane.b32.xlu1 %v3009_v26, %s3360_s7  ;;  %360 = vrot.lane.b32.xlu0 %v3002_v57, %s3360_s7  ;;  %v2275_v57 = vpack.i.b16 %v4154_v37, %v4129_v27  ;;  %v1789_v27 = vcombine.low %v4299_v54, %v4283_v14 }
  0xdd   : > { %v3039_v37 = vcombine.low %v4277_v50, %v4277_v50  ;;  %v4340_v46 = vrot.slane %v2269_v29, %v3678_v49  ;;  %v3178_v26 = vcombine.high %v4143_v47, %v4143_v47 }
  0xde   : > { %v1421_v45 = vpack.i.b16 %v1420_v34, %v1419_v25  ;;  %v1409_v11 = vpack.i.b16 %v1408_v19, %v1407_v60  ;;  %v2281_v25 = vpack.i.b16 %v4108_v6, %v4078_v58  ;;  %v3032_v58 = vcombine.low %v4280_v56, %v4280_v56 }
  0xdf   : > { %v1721_v6 = vcombine.low %v4302_v22, %v4289_v20  ;;  %v4330_v43 = vrot.slane %v2275_v57, %v3678_v49  ;;  %v4351_v5 = vrot.slane %v1789_v27, %v3807_v16  ;;  %v4358_v34 = vpop.permute.xlu1 %2537  ;;  %v4360_v19 = vpop.permute.xlu0 %2535  ;;  %v4378_v57 = vrot.slane %v5335_v8, %v3807_v16 }
  0xe0   : > { %v4305_v60 = vrot.slane %v1421_v45, %v3678_v49  ;;  %703 = vrot.lane.b32.xlu1 %v3165_v12, %s3362_s9  ;;  %668 = vrot.lane.b32.xlu0 %v3161_v10, %s3362_s9  ;;  %v4314_v9 = vrot.slane %v1409_v11, %v3678_v49  ;;  %v4337_v48 = vrot.slane %v2281_v25, %v3678_v49 }
  0xe1   : > { %v2307_v59 = vcombine.low %v4340_v46, %v4330_v43  ;;  %v4354_v17 = vrot.slane %v1721_v6, %v3807_v16  ;;  %v3195_v38 = vcombine.high %v4351_v5, %v4351_v5  ;;  %v5336_v25 = vcombine.high %v3821_v21, %v3824_v41 }
  0xe2   : > { %v2375_v12 = vcombine.low %v4337_v48, %v4327_v24  ;;  %v3010_v15 = vcombine.low %v4378_v57, %v4378_v57 }
  0xe3   : > { %v3191_v10 = vcombine.high %v4354_v17, %v4354_v17  ;;  %v4370_v11 = vrot.slane %v2307_v59, %v3807_v16  ;;  %v4384_v29 = vrot.slane %v5336_v25, %v3807_v16  ;;  %v4386_v27 = vpop.permute.xlu1 %2541 }
  0xe4   : > { %977 = vrot.lane.b32.xlu1 %v3039_v37, %s3360_s7  ;;  %942 = vrot.lane.b32.xlu0 %v3032_v58, %s3360_s7  ;;  %v4367_v45 = vrot.slane %v2375_v12, %v3807_v16  ;;  %v4388_v37 = vpop.permute.xlu0 %2539  ;;  %v5337_v12 = vcombine.high %v3990_v39, %v3996_v4 }
  0xe5   : > { %v3207_v6 = vcombine.high %v4370_v11, %v4370_v11  ;;  %v3003_v30 = vcombine.low %v4384_v29, %v4384_v29 }
  0xe6   : > { %v3211_v58 = vcombine.high %v4367_v45, %v4367_v45  ;;  %v4414_v59 = vrot.slane %v5337_v12, %v3807_v16  ;;  %v5343_v12 = vld [vmem:[#allocation9_spill] sm:$0xff] }
  0xe7   : > { %v4400_v21 = vpop.permute.xlu1 %2545 }
  0xe8   : > { %1337 = vrot.lane.b32.xlu1 %v3181_v3, %s3362_s9  ;;  %1302 = vrot.lane.b32.xlu0 %v3177_v31, %s3362_s9  ;;  %v4402_v41 = vpop.permute.xlu0 %2543  ;;  %v3166_v3 = vcombine.high %v4113_v7, %v4113_v7  ;;  %v3162_v31 = vcombine.high %v4116_v2, %v4116_v2  ;;  %v1540_v7 = vcombine.low %v4286_v32, %v4305_v60 }
  0xe9   : > { %v1472_v2 = vcombine.low %v4296_v18, %v4314_v9 }
  0xeb   : > { %v4428_v39 = vpop.permute.xlu1 %2549 }
  0xec   : > { %1884 = vrot.lane.b32.xlu1 %v3195_v38, %s3358_s5  ;;  %1849 = vrot.lane.b32.xlu0 %v3191_v10, %s3358_s5  ;;  %v5338_v38 = vld [vmem:[#allocation18_spill] sm:$0xff]  ;;  %v4430_v4 = vpop.permute.xlu0 %2547 }
  0xed   : > { %v5339_v10 = vcombine.high %v3999_v33, %v5338_v38  ;;  %v3040_v33 = vcombine.low %v4414_v59, %v4414_v59  ;;  %v4450_v38 = vrot.slane %v5343_v12, %v3678_v49  ;;  %v4466_v12 = vrot.slane %v1472_v2, %v3807_v16 }
  0xef   : > { %v4420_v8 = vrot.slane %v5339_v10, %v3807_v16  ;;  %v5344_v10 = vld [vmem:[#allocation25_spill] sm:$0xff] }
  0xf0   : > { %2470 = vrot.lane.b32.xlu1 %v3211_v58, %s3358_s5  ;;  %2435 = vrot.lane.b32.xlu0 %v3207_v6, %s3358_s5  ;;  %v5340_v58 = vld [vmem:[#allocation6_spill] sm:$0xff]  ;;  %v4460_v51 = vpop.permute.xlu0 %1277 }
  0xf1   : > { %v3033_v25 = vcombine.low %v4420_v8, %v4420_v8  ;;  %v4438_v6 = vrot.slane %v5340_v58, %v3678_v49  ;;  %v3182_v58 = vcombine.high %v5344_v10, %v5344_v10  ;;  %5346 = vst [vmem:[#allocation6_spill] sm:$0xff] %v4460_v51  ;;  %v3196_v51 = vcombine.high %v4171_v40, %v4171_v40 }
  0xf2   : > { %v1418_v40 = vpack.i.b16 %v4262_v28, %v4240_v36 }
  0xf4   : > { %400 = vrot.lane.b32.xlu1 %v3010_v15, %s3361_s8  ;;  %365 = vrot.lane.b32.xlu0 %v3003_v30, %s3361_s8  ;;  %v5341_v15 = vld [vmem:[#allocation7_spill] sm:$0xff]  ;;  %v4480_v2 = vpop.permute.xlu0 %1282 }
  0xf5   : > { %v4442_v30 = vrot.slane %v5341_v15, %v3678_v49  ;;  %v4458_v15 = vpop.permute.xlu1 %1312 }
  0xf6   : > { %5345 = vst [vmem:[#allocation18_spill] sm:$0xff] %v4458_v15  ;;  %v3192_v15 = vcombine.high %v4174_v52, %v4174_v52  ;;  %v1406_v52 = vpack.i.b16 %v4264_v63, %v4242_v55  ;;  %v3212_v55 = vcombine.high %v4213_v23, %v4213_v23  ;;  %v3157_v63 = vcombine.high %v4219_v62, %v4219_v62 }
  0xf7   : > { %v3173_v62 = vcombine.high %v4277_v50, %v4277_v50 }
  0xf8   : > { %708 = vrot.lane.b32.xlu1 %v3166_v3, %s3363_s10  ;;  %673 = vrot.lane.b32.xlu0 %v3162_v31, %s3363_s10  ;;  %v5342_v3 = vld [vmem:[#allocation8_spill] sm:$0xff] }
  0xf9   : > { %v4446_v31 = vrot.slane %v5342_v3, %v3678_v49  ;;  %v4463_v3 = vrot.slane %v1540_v7, %v3807_v16  ;;  %v3059_v7 = vcombine.low %v4466_v12, %v4466_v12  ;;  %v4478_v10 = vpop.permute.xlu1 %1317  ;;  %5348 = vst [vmem:[#allocation8_spill] sm:$0xff] %v4480_v2 }
  0xfa   : > { %5347 = vst [vmem:[#allocation7_spill] sm:$0xff] %v4478_v10 }
  0xfb   : > { %v2058_v47 = vcombine.low %v4442_v30, %v4446_v31 }
  0xfc   : > { %982 = vrot.lane.b32.xlu1 %v3040_v33, %s3361_s8  ;;  %947 = vrot.lane.b32.xlu0 %v3033_v25, %s3361_s8  ;;  %v2126_v33 = vcombine.low %v4438_v6, %v4450_v38  ;;  %v3066_v25 = vcombine.low %v4463_v3, %v4463_v3 }
 0x100   : > { %1342 = vrot.lane.b32.xlu1 %v3182_v58, %s3363_s10  ;;  %1307 = vrot.lane.b32.xlu0 %v3178_v26, %s3363_s10  ;;  %v4485_v26 = vrot.slane %v2126_v33, %v3807_v16  ;;  %v4488_v58 = vrot.slane %v2058_v47, %v3807_v16  ;;  %v1412_v47 = vpack.i.b16 %v4208_v53, %v4176_v1 }
 0x101   : > { %v4524_v53 = vrot.slane %v1406_v52, %v3678_v49 }
 0x102   : > { %v3093_v33 = vcombine.low %v4488_v58, %v4488_v58  ;;  %v4515_v2 = vrot.slane %v1412_v47, %v3678_v49 }
 0x104   : > { %1596 = vrot.lane.b32.xlu1 %v3066_v25, %s3357_s4  ;;  %1561 = vrot.lane.b32.xlu0 %v3059_v7, %s3357_s4  ;;  %v3100_v25 = vcombine.low %v4485_v26, %v4485_v26  ;;  %v1400_v7 = vpack.i.b16 %v4210_v35, %v4178_v13  ;;  %v4521_v13 = vrot.slane %v1418_v40, %v3678_v49 }
 0x105   : > { %v3208_v35 = vcombine.high %v4224_v42, %v4224_v42  ;;  %v1722_v40 = vcombine.high %v4302_v22, %v4289_v20 }
 0x106   : > { %v4518_v1 = vrot.slane %v1400_v7, %v3678_v49  ;;  %v1506_v23 = vcombine.low %v4515_v2, %v4521_v13  ;;  %v1790_v7 = vcombine.high %v4299_v54, %v4283_v14 }
 0x107   : > { %v4578_v54 = vrot.slane %v1722_v40, %v3807_v16  ;;  %v2376_v40 = vcombine.high %v4337_v48, %v4327_v24 }
 0x108   : > { %1889 = vrot.lane.b32.xlu1 %v3196_v51, %s3359_s6  ;;  %1854 = vrot.lane.b32.xlu0 %v3192_v15, %s3359_s6  ;;  %v4508_v51 = vpop.permute.xlu1 %380  ;;  %v4510_v15 = vpop.permute.xlu0 %345  ;;  %v1438_v42 = vcombine.low %v4518_v1, %v4524_v53  ;;  %v4559_v52 = vrot.slane %v1506_v23, %v3807_v16  ;;  %v4575_v20 = vrot.slane %v1790_v7, %v3807_v16 }
 0x109   : > { %5349 = vst [vmem:[#allocation9_spill] sm:$0xff] %v4508_v51  ;;  %5350 = vst [vmem:[#allocation25_spill] sm:$0xff] %v4510_v15  ;;  %v4617_v48 = vrot.slane %v2376_v40, %v3807_v16  ;;  %v3158_v40 = vcombine.high %v4378_v57, %v4378_v57  ;;  %v3170_v57 = vcombine.high %v4420_v8, %v4420_v8  ;;  %v5370_v8 = vld [vmem:[#allocation23_spill] sm:$0xff] }
 0x10a   : > { %5355 = vst [vmem:[#allocation34_spill] sm:$0xff] %v4559_v52 }
 0x10c   : > { %2182 = vrot.lane.b32.xlu1 %v3100_v25, %s3357_s4  ;;  %2147 = vrot.lane.b32.xlu0 %v3093_v33, %s3357_s4  ;;  %v4530_v36 = vpop.permute.xlu1 %1322  ;;  %v4532_v28 = vpop.permute.xlu0 %1287  ;;  %v3153_v25 = vcombine.high %v4230_v61, %v4230_v61  ;;  %v3169_v61 = vcombine.high %v4280_v56, %v4280_v56  ;;  %v3187_v56 = vcombine.high %v4559_v52, %v4559_v52 }
 0x10d   : > { %5351 = vst [vmem:[#allocation30_spill] sm:$0xff] %v4530_v36  ;;  %5352 = vst [vmem:[#allocation31_spill] sm:$0xff] %v4532_v28  ;;  %v5391_v28 = vcombine.high %v4296_v18, %v4314_v9 }
 0x10f   : > { %v4796_v36 = vrot.slane %v5391_v28, %v3807_v16 }
 0x110   : > { %2475 = vrot.lane.b32.xlu1 %v3212_v55, %s3359_s6  ;;  %2440 = vrot.lane.b32.xlu0 %v3208_v35, %s3359_s6  ;;  %v4544_v33 = vpop.permute.xlu1 %385  ;;  %v4546_v47 = vpop.permute.xlu0 %350  ;;  %v4562_v55 = vrot.slane %v1438_v42, %v3807_v16  ;;  %v5359_v42 = vld [vmem:[#allocation16_spill] sm:$0xff] }
 0x111   : > { %5353 = vst [vmem:[#allocation32_spill] sm:$0xff] %v4544_v33  ;;  %5354 = vst [vmem:[#allocation33_spill] sm:$0xff] %v4546_v47  ;;  %v3077_v47 = vcombine.low %v4578_v54, %v4578_v54  ;;  %v3118_v33 = vcombine.low %v4617_v48, %v4617_v48  ;;  %v3063_v9 = vcombine.low %v4796_v36, %v4796_v36 }
 0x112   : > { %5356 = vst [vmem:[#allocation35_spill] sm:$0xff] %v4562_v55  ;;  %v3183_v14 = vcombine.high %v4562_v55, %v4562_v55 }
 0x114   : > { %405 = vrot.lane.b32.xlu1 %v3157_v63, %s3362_s9  ;;  %370 = vrot.lane.b32.xlu0 %v3153_v25, %s3362_s9  ;;  %v5357_v25 = vcombine.low %v3936_v44, %v3948_v0 }
 0x116   : > { %v4590_v23 = vrot.slane %v5357_v25, %v3807_v16 }
 0x118   : > { %987 = vrot.lane.b32.xlu1 %v3173_v62, %s3362_s9  ;;  %v4565_v35 = vpop.permute.xlu1 %683  ;;  %952 = vrot.lane.b32.xlu0 %v3169_v61, %s3362_s9  ;;  %v4568_v50 = vpop.permute.xlu0 %648  ;;  %5358 = vst [vmem:[#allocation36_spill] sm:$0xff] %v4590_v23  ;;  %v5360_v62 = vld [vmem:[#allocation17_spill] sm:$0xff]  ;;  %v3203_v24 = vcombine.high %v4590_v23, %v4590_v23 }
 0x119   : > { %v5361_v61 = vcombine.low %v5359_v42, %v5360_v62 }
 0x11b   : > { %v4596_v7 = vrot.slane %v5361_v61, %v3807_v16 }
 0x11c   : > { %1601 = vrot.lane.b32.xlu1 %v3187_v56, %s3358_s5  ;;  %v4581_v22 = vpop.permute.xlu1 %693  ;;  %1566 = vrot.lane.b32.xlu0 %v3183_v14, %s3358_s5  ;;  %v4584_v63 = vpop.permute.xlu0 %658  ;;  %v2308_v56 = vcombine.high %v4340_v46, %v4330_v43  ;;  %v3084_v14 = vcombine.low %v4575_v20, %v4575_v20 }
 0x11d   : > { %5362 = vst [vmem:[#allocation16_spill] sm:$0xff] %v4596_v7  ;;  %v3199_v43 = vcombine.high %v4596_v7, %v4596_v7 }
 0x11e   : > { %v4620_v46 = vrot.slane %v2308_v56, %v3807_v16  ;;  %v3154_v56 = vcombine.high %v4384_v29, %v4384_v29 }
 0x120   : > { %1894 = vrot.lane.b32.xlu1 %v3084_v14, %s3360_s7  ;;  %v4607_v25 = vpop.permute.xlu1 %678  ;;  %1859 = vrot.lane.b32.xlu0 %v3077_v47, %s3360_s7  ;;  %v3111_v15 = vcombine.low %v4620_v46, %v4620_v46 }
 0x121   : > { %v4610_v61 = vpop.permute.xlu0 %643 }
 0x124   : > { %2187 = vrot.lane.b32.xlu1 %v3203_v24, %s3358_s5  ;;  %2152 = vrot.lane.b32.xlu0 %v3199_v43, %s3358_s5  ;;  %v4624_v14 = vpop.permute.xlu1 %688 }
 0x125   : > { %v4626_v47 = vpop.permute.xlu0 %653 }
 0x128   : > { %2480 = vrot.lane.b32.xlu1 %v3118_v33, %s3360_s7  ;;  %2445 = vrot.lane.b32.xlu0 %v3111_v15, %s3360_s7  ;;  %v3174_v15 = vcombine.high %v4414_v59, %v4414_v59  ;;  %v5368_v59 = vld [vmem:[#allocation22_spill] sm:$0xff] }
 0x12a   : > { %v4638_v24 = vpop.permute.xlu1 %962  ;;  %v4640_v43 = vpop.permute.xlu0 %927 }
 0x12b   : > { %5363 = vst [vmem:[#allocation17_spill] sm:$0xff] %v4640_v43 }
 0x12c   : > { %410 = vrot.lane.b32.xlu1 %v3158_v40, %s3363_s10  ;;  %375 = vrot.lane.b32.xlu0 %v3154_v56, %s3363_s10  ;;  %v3188_v40 = vcombine.high %v4463_v3, %v4463_v3  ;;  %v3184_v56 = vcombine.high %v4466_v12, %v4466_v12 }
 0x12e   : > { %v4644_v51 = vpop.permute.xlu1 %967  ;;  %v4646_v7 = vpop.permute.xlu0 %932 }
 0x12f   : > { %5364 = vst [vmem:[#allocation37_spill] sm:$0xff] %v4646_v7  ;;  %v5367_v7 = vld [vmem:[#allocation21_spill] sm:$0xff] }
 0x130   : > { %992 = vrot.lane.b32.xlu1 %v3174_v15, %s3363_s10  ;;  %957 = vrot.lane.b32.xlu0 %v3170_v57, %s3363_s10  ;;  %v5369_v43 = vcombine.high %v5367_v7, %v5368_v59  ;;  %v5371_v15 = vld [vmem:[#allocation24_spill] sm:$0xff]  ;;  %v1439_v59 = vcombine.high %v4518_v1, %v4524_v53 }
 0x131   : > { %v5372_v57 = vcombine.high %v5370_v8, %v5371_v15 }
 0x132   : > { %v4654_v29 = vpop.permute.xlu1 %1327  ;;  %v4656_v33 = vpop.permute.xlu0 %1292  ;;  %v4666_v23 = vrot.slane %v5369_v43, %v3807_v16  ;;  %v3204_v43 = vcombine.high %v4485_v26, %v4485_v26  ;;  %v5380_v26 = vld [vmem:[#allocation28_spill] sm:$0xff] }
 0x133   : > { %5365 = vst [vmem:[#allocation38_spill] sm:$0xff] %v4654_v29  ;;  %5366 = vst [vmem:[#allocation39_spill] sm:$0xff] %v4656_v33  ;;  %v4672_v55 = vrot.slane %v5372_v57, %v3807_v16  ;;  %v5377_v57 = vld [vmem:[#allocation26_spill] sm:$0xff] }
 0x134   : > { %1606 = vrot.lane.b32.xlu1 %v3188_v40, %s3359_s6  ;;  %1571 = vrot.lane.b32.xlu0 %v3184_v56, %s3359_s6  ;;  %v3085_v12 = vcombine.low %v4666_v23, %v4666_v23  ;;  %v3200_v40 = vcombine.high %v4488_v58, %v4488_v58  ;;  %v1507_v56 = vcombine.high %v4515_v2, %v4521_v13 }
 0x135   : > { %v3078_v7 = vcombine.low %v4672_v55, %v4672_v55 }
 0x136   : > { %v4676_v3 = vpop.permute.xlu1 %390  ;;  %v4678_v52 = vpop.permute.xlu0 %355 }
 0x137   : > { %5373 = vst [vmem:[#allocation21_spill] sm:$0xff] %v4676_v3  ;;  %5374 = vst [vmem:[#allocation22_spill] sm:$0xff] %v4678_v52  ;;  %v5381_v3 = vld [vmem:[#allocation29_spill] sm:$0xff] }
 0x138   : > { %1899 = vrot.lane.b32.xlu1 %v3085_v12, %s3361_s8  ;;  %1864 = vrot.lane.b32.xlu0 %v3078_v7, %s3361_s8  ;;  %v5378_v12 = vld [vmem:[#allocation27_spill] sm:$0xff]  ;;  %v5382_v58 = vcombine.high %v5380_v26, %v5381_v3  ;;  %v4724_v3 = vrot.slane %v1439_v59, %v3807_v16  ;;  %v5387_v26 = vcombine.high %v5359_v42, %v5360_v62 }
 0x139   : > { %v5379_v7 = vcombine.high %v5377_v57, %v5378_v12  ;;  %v4721_v57 = vrot.slane %v1507_v56, %v3807_v16  ;;  %v5386_v56 = vcombine.high %v3936_v44, %v3948_v0 }
 0x13a   : > { %v4694_v8 = vpop.permute.xlu1 %698  ;;  %v4696_v15 = vpop.permute.xlu0 %663  ;;  %v4708_v33 = vrot.slane %v5382_v58, %v3807_v16  ;;  %v4748_v58 = vrot.slane %v5387_v26, %v3807_v16  ;;  %v3209_v26 = vcombine.high %v4620_v46, %v4620_v46 }
 0x13b   : > { %5375 = vst [vmem:[#allocation23_spill] sm:$0xff] %v4694_v8  ;;  %5376 = vst [vmem:[#allocation24_spill] sm:$0xff] %v4696_v15  ;;  %v4702_v52 = vrot.slane %v5379_v7, %v3807_v16  ;;  %v3069_v12 = vcombine.low %v4721_v57, %v4721_v57  ;;  %v3062_v7 = vcombine.low %v4724_v3, %v4724_v3 }
 0x13c   : > { %2192 = vrot.lane.b32.xlu1 %v3204_v43, %s3359_s6  ;;  %2157 = vrot.lane.b32.xlu0 %v3200_v40, %s3359_s6  ;;  %v3112_v53 = vcombine.low %v4708_v33, %v4708_v33  ;;  %v4742_v59 = vrot.slane %v5386_v56, %v3807_v16  ;;  %v3096_v0 = vcombine.low %v4748_v58, %v4748_v58  ;;  %v2566_v56 = vshrl.u32 %v4358_v34, 16 }
 0x13d   : > { %v3119_v13 = vcombine.low %v4702_v52, %v4702_v52 }
 0x13e   : > { %v4712_v2 = vpop.permute.xlu1 %972  ;;  %v4714_v1 = vpop.permute.xlu0 %937  ;;  %v3103_v44 = vcombine.low %v4742_v59, %v4742_v59 }
 0x13f   : > { %5383 = vst [vmem:[#allocation26_spill] sm:$0xff] %v4714_v1  ;;  %v2572_v1 = vshrl.u32 %v4400_v21, 16 }
 0x140   : > { %2485 = vrot.lane.b32.xlu1 %v3119_v13, %s3361_s8  ;;  %2450 = vrot.lane.b32.xlu0 %v3112_v53, %s3361_s8 }
 0x142   : > { %v4728_v43 = vpop.permute.xlu1 %1332  ;;  %v4730_v40 = vpop.permute.xlu0 %1297 }
 0x143   : > { %5384 = vst [vmem:[#allocation27_spill] sm:$0xff] %v4728_v43  ;;  %5385 = vst [vmem:[#allocation28_spill] sm:$0xff] %v4730_v40  ;;  %v2560_v40 = vshrl.u32 %v4402_v41, 16  ;;  %v2573_v43 = vshrl.u32 %v4428_v39, 16 }
 0x144   : > { %1611 = vrot.lane.b32.xlu1 %v3069_v12, %s3360_s7  ;;  %1576 = vrot.lane.b32.xlu0 %v3062_v7, %s3360_s7  ;;  %v3197_v12 = vcombine.high %v4575_v20, %v4575_v20  ;;  %v3193_v7 = vcombine.high %v4578_v54, %v4578_v54  ;;  %v2554_v20 = vshrl.u32 %v4360_v19, 16  ;;  %v3213_v54 = vcombine.high %v4617_v48, %v4617_v48 }
 0x145   : > { %v5390_v48 = vcombine.high %v4286_v32, %v4305_v60  ;;  %v2574_v60 = vpack.i.b16 %v2573_v43, %v2572_v1  ;;  %v3194_v43 = vcombine.high %v4672_v55, %v4672_v55 }
 0x146   : > { %v4750_v13 = vpop.permute.xlu1 %1879  ;;  %v4752_v53 = vpop.permute.xlu0 %1844 }
 0x147   : > { %v4790_v46 = vrot.slane %v5390_v48, %v3807_v16 }
 0x148   : > { %1904 = vrot.lane.b32.xlu1 %v3197_v12, %s3362_s9  ;;  %1869 = vrot.lane.b32.xlu0 %v3193_v7, %s3362_s9  ;;  %v2567_v12 = vshrl.u32 %v4386_v27, 16  ;;  %v2555_v7 = vshrl.u32 %v4388_v37, 16 }
 0x149   : > { %v3070_v18 = vcombine.low %v4790_v46, %v4790_v46 }
 0x14a   : > { %v4764_v42 = vpop.permute.xlu1 %2465  ;;  %v4766_v62 = vpop.permute.xlu0 %2430  ;;  %v2568_v10 = vpack.i.b16 %v2567_v12, %v2566_v56  ;;  %v2556_v32 = vpack.i.b16 %v2555_v7, %v2554_v20 }
 0x14c   : > { %2197 = vrot.lane.b32.xlu1 %v3103_v44, %s3360_s7  ;;  %2162 = vrot.lane.b32.xlu0 %v3096_v0, %s3360_s7  ;;  %v2561_v44 = vshrl.u32 %v4430_v4, 16  ;;  %v4824_v28 = vrot.slane %v2568_v10, %v3678_v49 }
 0x14e   : > { %v4782_v29 = vpop.permute.xlu1 %395  ;;  %v4784_v0 = vpop.permute.xlu0 %360  ;;  %v2562_v48 = vpack.i.b16 %v2561_v44, %v2560_v40  ;;  %v4833_v40 = vrot.slane %v2556_v32, %v3678_v49  ;;  %v2565_v44 = vpack.i.b16 %v4386_v27, %v4358_v34  ;;  %v2571_v32 = vpack.i.b16 %v4428_v39, %v4400_v21 }
 0x14f   : > { %5388 = vst [vmem:[#allocation29_spill] sm:$0xff] %v4782_v29  ;;  %5389 = vst [vmem:[#allocation40_spill] sm:$0xff] %v4784_v0  ;;  %v2127_v29 = vcombine.high %v4438_v6, %v4450_v38  ;;  %v2059_v0 = vcombine.high %v4442_v30, %v4446_v31  ;;  %v5392_v6 = vld [vmem:[#allocation19_spill] sm:$0xff]  ;;  %v1928_v34 = vsel %vm412_vm6, %v4351_v5, %v4750_v13  ;;  %v5393_v13 = vld [vmem:[#allocation14_spill] sm:$0xff] }
 0x150   : > { %2490 = vrot.lane.b32.xlu1 %v3213_v54, %s3362_s9  ;;  %2455 = vrot.lane.b32.xlu0 %v3209_v26, %s3362_s9  ;;  %v1011_v30 = vsel %vm412_vm6, %v5392_v6, %v4638_v24  ;;  %v3198_v24 = vcombine.high %v4666_v23, %v4666_v23  ;;  %v4839_v56 = vrot.slane %v2562_v48, %v3678_v49 }
 0x151   : > { %v4818_v31 = vrot.slane %v2127_v29, %v3807_v16  ;;  %v4821_v38 = vrot.slane %v2059_v0, %v3807_v16  ;;  %v1013_v1 = vsel %vm416_vm7, %v1011_v30, %v4644_v51  ;;  %v4836_v29 = vrot.slane %v2574_v60, %v3678_v49 }
 0x152   : > { %v4804_v15 = vpop.permute.xlu1 %703  ;;  %v4806_v8 = vpop.permute.xlu0 %668  ;;  %v1015_v10 = vsel %vm419_vm8, %v1013_v1, %v4712_v2  ;;  %v2625_v2 = vcombine.low %v4833_v40, %v4839_v56  ;;  %v2553_v0 = vpack.i.b16 %v4388_v37, %v4360_v19  ;;  %v2559_v60 = vpack.i.b16 %v4430_v4, %v4402_v41 }
 0x153   : > { %v3104_v55 = vcombine.low %v4818_v31, %v4818_v31  ;;  %v3097_v54 = vcombine.low %v4821_v38, %v4821_v38  ;;  %v2693_v26 = vcombine.low %v4824_v28, %v4836_v29  ;;  %v3214_v48 = vcombine.high %v4702_v52, %v4702_v52 }
 0x154   : > { %1616 = vrot.lane.b32.xlu1 %v3070_v18, %s3361_s8  ;;  %1581 = vrot.lane.b32.xlu0 %v3063_v9, %s3361_s8  ;;  %v3210_v18 = vcombine.high %v4708_v33, %v4708_v33  ;;  %v1913_v19 = vsel %vm412_vm6, %v4354_v17, %v4752_v53  ;;  %v4886_v41 = vrot.slane %v2625_v2, %v3807_v16  ;;  %v5394_v9 = vld [vmem:[#allocation15_spill] sm:$0xff] }
 0x155   : > { %v4883_v21 = vrot.slane %v2693_v26, %v3807_v16  ;;  %v4895_v5 = vrot.slane %v2565_v44, %v3678_v49  ;;  %v4898_v52 = vrot.slane %v2553_v0, %v3678_v49  ;;  %v4903_v17 = vrot.slane %v2571_v32, %v3678_v49  ;;  %v5395_v44 = vld [vmem:[#allocation18_spill] sm:$0xff] }
 0x156   : > { %v978_v20 = vpop.permute.xlu1 %977  ;;  %v4843_v51 = vpop.permute.xlu0 %942  ;;  %v4906_v33 = vrot.slane %v2559_v60, %v3678_v49  ;;  %v727_v53 = vsel %vm412_vm6, %v5393_v13, %v4607_v25  ;;  %v712_v6 = vsel %vm412_vm6, %v5394_v9, %v4610_v61  ;;  %v2514_v30 = vsel %vm412_vm6, %v4367_v45, %v4764_v42  ;;  %v5397_v32 = vld [vmem:[#allocation6_spill] sm:$0xff] }
 0x157   : > { %v4846_v23 = vsel %vm422_vm9, %v1015_v10, %v978_v20  ;;  %v2499_v1 = vsel %vm412_vm6, %v4370_v11, %v4766_v62  ;;  %v3130_v49 = vcombine.low %v4883_v21, %v4883_v21  ;;  %v3123_v25 = vcombine.low %v4886_v41, %v4886_v41 }
 0x158   : > { %1909 = vrot.lane.b32.xlu1 %v3198_v24, %s3363_s10  ;;  %1874 = vrot.lane.b32.xlu0 %v3194_v43, %s3363_s10  ;;  %v729_v45 = vsel %vm416_vm7, %v727_v53, %v4565_v35  ;;  %v714_v11 = vsel %vm416_vm7, %v712_v6, %v4568_v50  ;;  %v2659_v20 = vcombine.low %v4895_v5, %v4903_v17  ;;  %v5401_v6 = vld [vmem:[#allocation7_spill] sm:$0xff] }
 0x159   : > { %v731_v42 = vsel %vm419_vm8, %v729_v45, %v4624_v14  ;;  %v716_v62 = vsel %vm419_vm8, %v714_v11, %v4626_v47  ;;  %v2591_v35 = vcombine.low %v4898_v52, %v4906_v33  ;;  %v3185_v14 = vcombine.high %v4724_v3, %v4724_v3  ;;  %v5396_v3 = vld [vmem:[#allocation10_spill] sm:$0xff] }
 0x15a   : > { %v4858_v12 = vpop.permute.xlu1 %1337  ;;  %v4860_v7 = vpop.permute.xlu0 %1302  ;;  %v3205_v47 = vcombine.high %v4742_v59, %v4742_v59  ;;  %v733_v26 = vsel %vm422_vm9, %v731_v42, %v4581_v22  ;;  %v718_v2 = vsel %vm422_vm9, %v716_v62, %v4584_v63  ;;  %v1361_v0 = vsel %vm412_vm6, %v5396_v3, %v5395_v44  ;;  %v5398_v59 = vld [vmem:[#allocation11_spill] sm:$0xff]  ;;  %v5400_v63 = vld [vmem:[#allocation24_spill] sm:$0xff]  ;;  %v5403_v11 = vld [vmem:[#allocation30_spill] sm:$0xff] }
 0x15b   : > { %v1346_v60 = vsel %vm412_vm6, %v5398_v59, %v5397_v32  ;;  %v5399_v22 = vld [vmem:[#allocation23_spill] sm:$0xff]  ;;  %v4980_v13 = vrot.slane %v2591_v35, %v3807_v16  ;;  %v5405_v35 = vld [vmem:[#allocation38_spill] sm:$0xff] }
 0x15c   : > { %2202 = vrot.lane.b32.xlu1 %v3104_v55, %s3361_s8  ;;  %2167 = vrot.lane.b32.xlu0 %v3097_v54, %s3361_s8  ;;  %v3189_v54 = vcombine.high %v4721_v57, %v4721_v57  ;;  %v3201_v57 = vcombine.high %v4748_v58, %v4748_v58  ;;  %v5404_v62 = vld [vmem:[#allocation31_spill] sm:$0xff] }
 0x15d   : > { %v3215_v45 = vcombine.high %v4980_v13, %v4980_v13 }
 0x15e   : > { %v1885_v27 = vpop.permute.xlu1 %1884  ;;  %v1850_v37 = vpop.permute.xlu0 %1849 }
 0x15f   : > { %v4889_v39 = vsel %vm416_vm7, %v1928_v34, %v1885_v27  ;;  %v4892_v4 = vsel %vm416_vm7, %v1913_v19, %v1850_v37  ;;  %v4977_v37 = vrot.slane %v2659_v20, %v3807_v16 }
 0x160   : > { %2495 = vrot.lane.b32.xlu1 %v3214_v48, %s3363_s10  ;;  %2460 = vrot.lane.b32.xlu0 %v3210_v18, %s3363_s10  ;;  %v735_v48 = vsel %vm425_vm10, %v733_v26, %v5399_v22  ;;  %v720_v18 = vsel %vm425_vm10, %v718_v2, %v5400_v63  ;;  %v5407_v26 = vld [vmem:[#allocation27_spill] sm:$0xff]  ;;  %v3186_v22 = vcombine.high %v4796_v36, %v4796_v36 }
 0x161   : > { %v737_v34 = vsel %vm428_vm11, %v735_v48, %v4804_v15  ;;  %v722_v58 = vsel %vm428_vm11, %v720_v18, %v4806_v8  ;;  %v2592_v36 = vcombine.high %v4898_v52, %v4906_v33  ;;  %v3216_v52 = vcombine.high %v4886_v41, %v4886_v41 }
 0x162   : > { %v2471_v24 = vpop.permute.xlu1 %2470  ;;  %v2436_v43 = vpop.permute.xlu0 %2435 }
 0x163   : > { %v4925_v10 = vsel %vm416_vm7, %v2514_v30, %v2471_v24  ;;  %v4928_v61 = vsel %vm416_vm7, %v2499_v1, %v2436_v43  ;;  %v1363_v30 = vsel %vm416_vm7, %v1361_v0, %v5401_v6  ;;  %v5402_v1 = vld [vmem:[#allocation8_spill] sm:$0xff]  ;;  %v2606_v33 = vrot.slane %v2592_v36, %v3807_v16  ;;  %v5416_v36 = vld [vmem:[#allocation13_spill] sm:$0xff] }
 0x164   : > { %2749 = vrot.lane.b32.xlu1 %v3130_v49, %s3357_s4  ;;  %2714 = vrot.lane.b32.xlu0 %v3123_v25, %s3357_s4  ;;  %v1348_v15 = vsel %vm416_vm7, %v1346_v60, %v5402_v1  ;;  %v3219_v25 = vcombine.high %v4977_v37, %v4977_v37  ;;  %v1365_v42 = vsel %vm419_vm8, %v1363_v30, %v5403_v11  ;;  %s5225_s4 = scalar_lea.hbm %s5270_s3, %s3223_s26 }
 0x165   : > { %v1350_v20 = vsel %vm419_vm8, %v1348_v15, %v5404_v62  ;;  %v3190_v60 = vcombine.high %v4790_v46, %v4790_v46  ;;  %v2660_v46 = vcombine.high %v4895_v5, %v4903_v17  ;;  %v3220_v5 = vcombine.high %v4883_v21, %v4883_v21 }
 0x166   : > { %v4944_v55 = vpop.permute.xlu1 %400  ;;  %v4946_v50 = vpop.permute.xlu0 %365  ;;  %v3126_v21 = vcombine.low %v2606_v33, %v2606_v33 }
 0x167   : > { %v2674_v17 = vrot.slane %v2660_v46, %v3807_v16  ;;  %v5415_v46 = vld [vmem:[#allocation25_spill] sm:$0xff] }
 0x168   : > { %1621 = vrot.lane.b32.xlu1 %v3189_v54, %s3362_s9  ;;  %1586 = vrot.lane.b32.xlu0 %v3185_v14, %s3362_s9  ;;  %v1367_v54 = vsel %vm422_vm9, %v1365_v42, %v5405_v35  ;;  %v5406_v14 = vld [vmem:[#allocation39_spill] sm:$0xff] }
 0x169   : > { %v1369_v2 = vsel %vm425_vm10, %v1367_v54, %v5407_v26  ;;  %v5410_v35 = vld [vmem:[#allocation35_spill] sm:$0xff]  ;;  %v3364_v26 = vmov 0  }
 0x16a   : > { %v709_v19 = vpop.permute.xlu1 %708  ;;  %v674_v27 = vpop.permute.xlu0 %673  ;;  %v1371_v3 = vsel %vm428_vm11, %v1369_v2, %v4858_v12  ;;  %v3206_v12 = vcombine.high %v4818_v31, %v4818_v31  ;;  %v2694_v31 = vcombine.high %v4824_v28, %v4836_v29  ;;  %2898 = vmatprep.mubr.bf16.mxu0 %v3364_v26  ;;  %3276 = vset.pattern.permute.xlu0 %v3364_v26 }
 0x16b   : > { %v739_v53 = vsel %vm431_vm12, %v737_v34, %v709_v19  ;;  %v724_v9 = vsel %vm431_vm12, %v722_v58, %v674_v27 }
 0x16c   : > { %v3028_v24 = vcombine.low %v724_v9, %v739_v53  ;;  %2207 = vrot.lane.b32.xlu1 %v3205_v47, %s3362_s9  ;;  %2172 = vrot.lane.b32.xlu0 %v3201_v57, %s3362_s9  ;;  %v1352_v47 = vsel %vm422_vm9, %v1350_v20, %v5406_v14  ;;  %v5408_v57 = vld [vmem:[#allocation28_spill] sm:$0xff]  ;;  %v2708_v41 = vrot.slane %v2694_v31, %v3807_v16 }
 0x16d   : > { %v1354_v44 = vsel %vm425_vm10, %v1352_v47, %v5408_v57  ;;  %v5417_v31 = vld [vmem:[#allocation32_spill] sm:$0xff] }
 0x16e   : > { %v745_v8 = vrot.slane %v3028_v24, 6  ;;  %v4990_v43 = vpop.permute.xlu1 %982  ;;  %v4992_v49 = vpop.permute.xlu0 %947  ;;  %v1356_v0 = vsel %vm428_vm11, %v1354_v44, %v4860_v7  ;;  %v3202_v7 = vcombine.high %v4821_v38, %v4821_v38  ;;  %v2626_v38 = vcombine.high %v4833_v40, %v4839_v56  ;;  %v2824_v44 = vld [vmem:[%s5269_s2] sm:$0xff] }
 0x16f   : > { %v3133_v56 = vcombine.low %v2674_v17, %v2674_v17 }
 0x170   : > { %747 = vst [vmem:[#allocation2] sm:$0xcc] %v745_v8  ;;  %2754 = vrot.lane.b32.xlu1 %v3219_v25, %s3358_s5  ;;  %2719 = vrot.lane.b32.xlu0 %v3215_v45, %s3358_s5  ;;  %v2640_v6 = vrot.slane %v2626_v38, %v3807_v16  ;;  %v3221_v25 = vcombine.high %v2674_v17, %v2674_v17  ;;  %v5419_v17 = vld [vmem:[#allocation21_spill] sm:$0xff]  ;;  %s2920_s5 = scalar_lea.sflag [#allocation4], %s161_s24 }
 0x171   : > { %v3217_v45 = vcombine.high %v2606_v33, %v2606_v33 }
 0x172   : > { %v1343_v32 = vpop.permute.xlu1 %1342  ;;  %v1308_v59 = vpop.permute.xlu0 %1307  ;;  %v3127_v1 = vcombine.low %v2640_v6, %v2640_v6  ;;  %v3218_v62 = vcombine.high %v2640_v6, %v2640_v6 }
 0x173   : > { %v1373_v48 = vsel %vm431_vm12, %v1371_v3, %v1343_v32  ;;  %v1358_v63 = vsel %vm431_vm12, %v1356_v0, %v1308_v59  ;;  %v5411_v32 = vld [vmem:[#allocation36_spill] sm:$0xff] }
 0x174   : > { %v3058_v18 = vcombine.low %v1358_v63, %v1373_v48  ;;  %1626 = vrot.lane.b32.xlu1 %v3190_v60, %s3363_s10  ;;  %1591 = vrot.lane.b32.xlu0 %v3186_v22, %s3363_s10  ;;  %v5412_v60 = vld [vmem:[#allocation16_spill] sm:$0xff] }
 0x176   : > { %v1379_v34 = vrot.slane %v3058_v18, 6  ;;  %v1597_v58 = vpop.permute.xlu1 %1596  ;;  %v1562_v19 = vpop.permute.xlu0 %1561  ;;  %v5413_v18 = vld [vmem:[#allocation9_spill] sm:$0xff] }
 0x177   : > { %v1630_v54 = vsel %vm412_vm6, %v5410_v35, %v1562_v19 }
 0x178   : > { %1381 = vst [vmem:[#allocation2 + $0x8] sm:$0xcc] %v1379_v34  ;;  %2212 = vrot.lane.b32.xlu1 %v3206_v12, %s3363_s10  ;;  %2177 = vrot.lane.b32.xlu0 %v3202_v7, %s3363_s10  ;;  %v5414_v12 = vld [vmem:[#allocation12_spill] sm:$0xff]  ;;  %v415_v34 = vsel %vm412_vm6, %v5416_v36, %v5415_v46 }
 0x179   : > { %v436_v7 = vsel %vm412_vm6, %v5414_v12, %v5413_v18 }
 0x17a   : > { %v1890_v27 = vpop.permute.xlu1 %1889  ;;  %v1855_v53 = vpop.permute.xlu0 %1854  ;;  %v438_v38 = vsel %vm416_vm7, %v436_v7, %v5417_v31 }
 0x17b   : > { %v5046_v9 = vsel %vm419_vm8, %v4889_v39, %v1890_v27  ;;  %v5050_v28 = vsel %vm419_vm8, %v4892_v4, %v1855_v53  ;;  %v3134_v4 = vcombine.low %v2708_v41, %v2708_v41  ;;  %v5418_v27 = vld [vmem:[#allocation33_spill] sm:$0xff]  ;;  %v440_v33 = vsel %vm419_vm8, %v438_v38, %v5419_v17 }
 0x17c   : > { %2759 = vrot.lane.b32.xlu1 %v3220_v5, %s3359_s6  ;;  %2724 = vrot.lane.b32.xlu0 %v3216_v52, %s3359_s6  ;;  %v418_v53 = vsel %vm416_vm7, %v415_v34, %v5418_v27  ;;  %s3289_s6 = scalar_lea.vmem %s5227_s28, 256 }
 0x17d   : > { %p3290_p11 = scmp.ne.s32.totalorder %s5227_s28, %s3289_s6 }
 0x17e   : > { %v2183_v40 = vpop.permute.xlu1 %2182  ;;  %v2148_v29 = vpop.permute.xlu0 %2147 }
 0x17f   : > { %v2231_v59 = vsel %vm412_vm6, %v5411_v32, %v2183_v40  ;;  %v2216_v22 = vsel %vm412_vm6, %v5412_v60, %v2148_v29  ;;  %v5420_v40 = vld [vmem:[#allocation22_spill] sm:$0xff]  ;;  %p3291_p12 = pnand %p3290_p11, %p3424_p5 }
 0x180   : > { %2764 = vrot.lane.b32.xlu1 %v3133_v56, %s3360_s7  ;;  %2729 = vrot.lane.b32.xlu0 %v3126_v21, %s3360_s7  ;;  %v421_v29 = vsel %vm419_vm8, %v418_v53, %v5420_v40  ;;  %v5421_v56 = vld [vmem:[#allocation29_spill] sm:$0xff]  ;;  %s3293_s7 = sshll.u32 %s3365_s16, 4  ;;  %s3294_s7 = int_to_ptr.vmem [resolvable:$false] %s3293_s7 }
 0x181   : > { %v442_v21 = vsel %vm422_vm9, %v440_v33, %v5421_v56  ;;  %p3292_p13 = pneg %p3291_p12  ;;  %p3296_p0 = scmp.lt.s32.totalorder %s5227_s28, %s3294_s7 }
 0x182   : > { %v2476_v39 = vpop.permute.xlu1 %2475  ;;  %v2441_v30 = vpop.permute.xlu0 %2440 }
 0x183   : > { %v5060_v15 = vsel %vm419_vm8, %v4925_v10, %v2476_v39  ;;  %v5064_v24 = vsel %vm419_vm8, %v4928_v61, %v2441_v30  ;;  %v3222_v10 = vcombine.high %v2708_v41, %v2708_v41  ;;  %v5409_v61 = vld [vmem:[#allocation34_spill] sm:$0xff]  ;;  %v5422_v41 = vld [vmem:[#allocation40_spill] sm:$0xff]  ;;  %v5423_v39 = vld [vmem:[#allocation17_spill] sm:$0xff] }
 0x184   : > { %2769 = vrot.lane.b32.xlu1 %v3134_v4, %s3361_s8  ;;  %2734 = vrot.lane.b32.xlu0 %v3127_v1, %s3361_s8  ;;  %v1645_v20 = vsel %vm412_vm6, %v5409_v61, %v1597_v58  ;;  %v424_v6 = vsel %vm422_vm9, %v421_v29, %v5422_v41  ;;  %v5424_v30 = vld [vmem:[#allocation20_spill] sm:$0xff]  ;;  %v444_v1 = vsel %vm425_vm10, %v442_v21, %v4944_v55  ;;  %s3295_s8 = scalar_lea.vmem %s3294_s7, 512 }
 0x185   : > { %v996_v4 = vsel %vm412_vm6, %v5424_v30, %v5423_v39  ;;  %p3297_p1 = scmp.lt.s32.totalorder %s3295_s8, %s3289_s6 }
 0x186   : > { %v406_v16 = vpop.permute.xlu1 %405  ;;  %v371_v8 = vpop.permute.xlu0 %370 }
 0x187   : > { %p3298_p2 = por %p3297_p1, %p3296_p0 }
 0x188   : > { %2774 = vrot.lane.b32.xlu1 %v3221_v25, %s3362_s9  ;;  %2739 = vrot.lane.b32.xlu0 %v3217_v45, %s3362_s9  ;;  %v427_v25 = vsel %vm425_vm10, %v424_v6, %v4946_v50  ;;  %v5425_v45 = vld [vmem:[#allocation37_spill] sm:$0xff] }
 0x189   : > { %v430_v61 = vsel %vm428_vm11, %v427_v25, %v371_v8  ;;  %p3299_p3 = pnand %p3298_p2, %p3292_p13 }
 0x18a   : > { %v988_v11 = vpop.permute.xlu1 %987  ;;  %v953_v42 = vpop.permute.xlu0 %952 }
 0x18c   : > { %2779 = vrot.lane.b32.xlu1 %v3222_v10, %s3363_s10  ;;  %2744 = vrot.lane.b32.xlu0 %v3218_v62, %s3363_s10  ;;  %v998_v10 = vsel %vm416_vm7, %v996_v4, %v5425_v45  ;;  %v446_v62 = vsel %vm428_vm11, %v444_v1, %v406_v16 }
 0x18e   : > { %v1602_v14 = vpop.permute.xlu1 %1601  ;;  %v1567_v47 = vpop.permute.xlu0 %1566 }
 0x18f   : > { %v5077_v2 = vsel %vm416_vm7, %v1645_v20, %v1602_v14  ;;  %v5080_v57 = vsel %vm416_vm7, %v1630_v54, %v1567_v47  ;;  %v5426_v54 = vld [vmem:[#allocation26_spill] sm:$0xff] }
 0x190   : > { %2827 = vperm.xlu0 %3276, %v2824_v44   ;;  %v1000_v14 = vsel %vm419_vm8, %v998_v10, %v5426_v54  ;;  %v1019_v44 = vsel %vm425_vm10, %v4846_v23, %v4990_v43 }
 0x191   : > { %v1002_v55 = vsel %vm422_vm9, %v1000_v14, %v4843_v51  ;;  %v1021_v8 = vsel %vm428_vm11, %v1019_v44, %v988_v11 }
 0x192   : > { %v5085_v3 = vpop.permute.xlu1 %1894  ;;  %v5087_v0 = vpop.permute.xlu0 %1859  ;;  %v1004_v16 = vsel %vm425_vm10, %v1002_v55, %v4992_v49 }
 0x193   : > { %v1006_v32 = vsel %vm428_vm11, %v1004_v16, %v953_v42  ;;  %v1934_v56 = vsel %vm422_vm9, %v5046_v9, %v5085_v3  ;;  %v1919_v21 = vsel %vm422_vm9, %v5050_v28, %v5087_v0 }
 0x196   : > { %v2188_v48 = vpop.permute.xlu1 %2187  ;;  %v2153_v63 = vpop.permute.xlu0 %2152 }
 0x197   : > { %v5100_v58 = vsel %vm416_vm7, %v2231_v59, %v2188_v48  ;;  %v5103_v19 = vsel %vm416_vm7, %v2216_v22, %v2153_v63 }
 0x19a   : > { %v5109_v5 = vpop.permute.xlu1 %2480  ;;  %v5111_v52 = vpop.permute.xlu0 %2445 }
 0x19b   : > { %v2520_v28 = vsel %vm422_vm9, %v5060_v15, %v5109_v5  ;;  %v2505_v0 = vsel %vm422_vm9, %v5064_v24, %v5111_v52 }
 0x19e   : > { %v411_v20 = vpop.permute.xlu1 %410  ;;  %v376_v35 = vpop.permute.xlu0 %375 }
 0x19f   : > { %v448_v47 = vsel %vm431_vm12, %v446_v62, %v411_v20  ;;  %v433_v26 = vsel %vm431_vm12, %v430_v61, %v376_v35 }
 0x1a0   : > { %v3013_v50 = vcombine.low %v433_v26, %v448_v47 }
 0x1a2   : > { %455 = vst [vmem:[#allocation2] sm:$0x33] %v3013_v50  ;;  %v993_v59 = vpop.permute.xlu1 %992  ;;  %v958_v60 = vpop.permute.xlu0 %957 }
 0x1a3   : > { %v1023_v22 = vsel %vm431_vm12, %v1021_v8, %v993_v59  ;;  %v1008_v48 = vsel %vm431_vm12, %v1006_v32, %v958_v60 }
 0x1a4   : > { %v3043_v51 = vcombine.low %v1008_v48, %v1023_v22 }
 0x1a6   : > { %1030 = vst [vmem:[#allocation2 + $0x8] sm:$0x33] %v3043_v51  ;;  %v1607_v63 = vpop.permute.xlu1 %1606  ;;  %v1572_v18 = vpop.permute.xlu0 %1571 }
 0x1a7   : > { %v1649_v60 = vsel %vm419_vm8, %v5077_v2, %v1607_v63  ;;  %v1634_v22 = vsel %vm419_vm8, %v5080_v57, %v1572_v18 }
 0x1aa   : > { %v1900_v12 = vpop.permute.xlu1 %1899  ;;  %v1865_v23 = vpop.permute.xlu0 %1864 }
 0x1ab   : > { %v1936_v41 = vsel %vm425_vm10, %v1934_v56, %v1900_v12  ;;  %v1921_v6 = vsel %vm425_vm10, %v1919_v21, %v1865_v23 }
 0x1ad   : > { %v3277_v43 = vld [vmem:[#allocation2 + $0x4] ss:$8 sps:$4 sm:$0xff]   ;;  %v3279_v7 = vld [vmem:[#allocation2] ss:$8 sps:$4 sm:$0xff]  }
 0x1ae   : > { %v5147_v49 = vpop.permute.xlu1 %2192  ;;  %v5149_v11 = vpop.permute.xlu0 %2157  ;;  %2866 = vmatprep.subr.bf16.mxu0 %v3277_v43 }
 0x1af   : > { %2867 = vmatpush1.bf16.msra.mxu0 %v3279_v7  ;;  %v2235_v2 = vsel %vm419_vm8, %v5100_v58, %v5147_v49  ;;  %v2220_v57 = vsel %vm419_vm8, %v5103_v19, %v5149_v11 }
 0x1b2   : > { %v2486_v42 = vpop.permute.xlu1 %2485  ;;  %v2451_v46 = vpop.permute.xlu0 %2450 }
 0x1b3   : > { %v2522_v61 = vsel %vm425_vm10, %v2520_v28, %v2486_v42  ;;  %v2507_v20 = vsel %vm425_vm10, %v2505_v0, %v2451_v46 }
 0x1b6   : > { %v1612_v36 = vpop.permute.xlu1 %1611  ;;  %v1577_v34 = vpop.permute.xlu0 %1576 }
 0x1b7   : > { %v1651_v48 = vsel %vm422_vm9, %v1649_v60, %v1612_v36  ;;  %v1636_v51 = vsel %vm422_vm9, %v1634_v22, %v1577_v34 }
 0x1ba   : > { %v1905_v31 = vpop.permute.xlu1 %1904  ;;  %v1870_v38 = vpop.permute.xlu0 %1869 }
 0x1bb   : > { %v1938_v39 = vsel %vm428_vm11, %v1936_v41, %v1905_v31  ;;  %v1923_v30 = vsel %vm428_vm11, %v1921_v6, %v1870_v38 }
 0x1be   : > { %v2198_v27 = vpop.permute.xlu1 %2197  ;;  %v2163_v53 = vpop.permute.xlu0 %2162 }
 0x1bf   : > { %v2237_v36 = vsel %vm422_vm9, %v2235_v2, %v2198_v27  ;;  %v2222_v34 = vsel %vm422_vm9, %v2220_v57, %v2163_v53 }
 0x1c2   : > { %v2491_v17 = vpop.permute.xlu1 %2490  ;;  %v2456_v33 = vpop.permute.xlu0 %2455 }
 0x1c3   : > { %v2524_v35 = vsel %vm428_vm11, %v2522_v61, %v2491_v17  ;;  %v2509_v54 = vsel %vm428_vm11, %v2507_v20, %v2456_v33 }
 0x1c6   : > { %v1617_v40 = vpop.permute.xlu1 %1616  ;;  %v1582_v29 = vpop.permute.xlu0 %1581 }
 0x1c7   : > { %v1653_v12 = vsel %vm425_vm10, %v1651_v48, %v1617_v40  ;;  %v1638_v23 = vsel %vm425_vm10, %v1636_v51, %v1582_v29 }
 0x1ca   : > { %v1910_v4 = vpop.permute.xlu1 %1909  ;;  %v1875_v1 = vpop.permute.xlu0 %1874 }
 0x1cb   : > { %v1940_v25 = vsel %vm431_vm12, %v1938_v39, %v1910_v4  ;;  %v1925_v45 = vsel %vm431_vm12, %v1923_v30, %v1875_v1 }
 0x1cc   : > { %v3088_v10 = vcombine.low %v1925_v45, %v1940_v25 }
 0x1ce   : > { %v1946_v9 = vrot.slane %v3088_v10, 6  ;;  %v2203_v3 = vpop.permute.xlu1 %2202  ;;  %v2168_v62 = vpop.permute.xlu0 %2167 }
 0x1cf   : > { %v2239_v38 = vsel %vm425_vm10, %v2237_v36, %v2203_v3  ;;  %v2224_v17 = vsel %vm425_vm10, %v2222_v34, %v2168_v62 }
 0x1d0   : > { %1948 = vst [vmem:[#allocation2 + $0x10] sm:$0xcc] %v1946_v9 }
 0x1d2   : > { %v2496_v14 = vpop.permute.xlu1 %2495  ;;  %v2461_v47 = vpop.permute.xlu0 %2460 }
 0x1d3   : > { %v2526_v26 = vsel %vm431_vm12, %v2524_v35, %v2496_v14  ;;  %v2511_v55 = vsel %vm431_vm12, %v2509_v54, %v2461_v47 }
 0x1d4   : > { %v3122_v15 = vcombine.low %v2511_v55, %v2526_v26 }
 0x1d6   : > { %v2532_v5 = vrot.slane %v3122_v15, 6  ;;  %v2750_v50 = vpop.permute.xlu1 %2749  ;;  %v2715_v44 = vpop.permute.xlu0 %2714 }
 0x1d7   : > { %v2798_v4 = vsel %vm412_vm6, %v4977_v37, %v2750_v50  ;;  %v2783_v1 = vsel %vm412_vm6, %v4980_v13, %v2715_v44  ;;  %v2818_v44 = vld [vmem:[%s5268_s1] sm:$0xf] }
 0x1d8   : > { %2534 = vst [vmem:[#allocation2 + $0x18] sm:$0xcc] %v2532_v5 }
 0x1da   : > { %v1622_v24 = vpop.permute.xlu1 %1621  ;;  %v1587_v52 = vpop.permute.xlu0 %1586 }
 0x1db   : > { %v1655_v43 = vsel %vm428_vm11, %v1653_v12, %v1622_v24  ;;  %v1640_v7 = vsel %vm428_vm11, %v1638_v23, %v1587_v52 }
 0x1de   : > { %v2208_v16 = vpop.permute.xlu1 %2207  ;;  %v2173_v8 = vpop.permute.xlu0 %2172 }
 0x1df   : > { %v2241_v33 = vsel %vm428_vm11, %v2239_v38, %v2208_v16  ;;  %v2226_v58 = vsel %vm428_vm11, %v2224_v17, %v2173_v8 }
 0x1e2   : > { %v2755_v32 = vpop.permute.xlu1 %2754  ;;  %v2720_v59 = vpop.permute.xlu0 %2719 }
 0x1e3   : > { %v2800_v25 = vsel %vm416_vm7, %v2798_v4, %v2755_v32  ;;  %v2785_v45 = vsel %vm416_vm7, %v2783_v1, %v2720_v59 }
 0x1e6   : > { %v1627_v42 = vpop.permute.xlu1 %1626  ;;  %v1592_v46 = vpop.permute.xlu0 %1591 }
 0x1e7   : > { %v1657_v63 = vsel %vm431_vm12, %v1655_v43, %v1627_v42  ;;  %v1642_v18 = vsel %vm431_vm12, %v1640_v7, %v1592_v46 }
 0x1e8   : > { %v3073_v31 = vcombine.low %v1642_v18, %v1657_v63 }
 0x1ea   : > { %1664 = vst [vmem:[#allocation2 + $0x10] sm:$0x33] %v3073_v31  ;;  %v2213_v49 = vpop.permute.xlu1 %2212  ;;  %v2178_v19 = vpop.permute.xlu0 %2177 }
 0x1eb   : > { %v2243_v11 = vsel %vm431_vm12, %v2241_v33, %v2213_v49  ;;  %v2228_v40 = vsel %vm431_vm12, %v2226_v58, %v2178_v19 }
 0x1ec   : > { %v3107_v29 = vcombine.low %v2228_v40, %v2243_v11 }
 0x1ee   : > { %2250 = vst [vmem:[#allocation2 + $0x18] sm:$0x33] %v3107_v29  ;;  %v2760_v27 = vpop.permute.xlu1 %2759  ;;  %v2725_v53 = vpop.permute.xlu0 %2724 }
 0x1ef   : > { %v2802_v3 = vsel %vm419_vm8, %v2800_v25, %v2760_v27  ;;  %v2787_v62 = vsel %vm419_vm8, %v2785_v45, %v2725_v53 }
 0x1f2   : > { %v2765_v56 = vpop.permute.xlu1 %2764  ;;  %v2730_v21 = vpop.permute.xlu0 %2729 }
 0x1f3   : > { %v2804_v28 = vsel %vm422_vm9, %v2802_v3, %v2765_v56  ;;  %v2789_v0 = vsel %vm422_vm9, %v2787_v62, %v2730_v21 }
 0x1f5   : > { %v3280_v41 = vld [vmem:[#allocation2 + $0x14] ss:$8 sps:$4 sm:$0xff]   ;;  %v3282_v6 = vld [vmem:[#allocation2 + $0x10] ss:$8 sps:$4 sm:$0xff]  }
 0x1f6   : > { %v2770_v39 = vpop.permute.xlu1 %2769  ;;  %v2735_v30 = vpop.permute.xlu0 %2734  ;;  %2868 = vmatprep.subr.bf16.mxu0 %v3280_v41 }
 0x1f7   : > { %2869 = vmatpush1.bf16.msra.mxu0 %v3282_v6  ;;  %v2806_v61 = vsel %vm425_vm10, %v2804_v28, %v2770_v39  ;;  %v2791_v37 = vsel %vm425_vm10, %v2789_v0, %v2735_v30 }
 0x1fa   : > { %v2775_v10 = vpop.permute.xlu1 %2774  ;;  %v2740_v9 = vpop.permute.xlu0 %2739 }
 0x1fb   : > { %v2808_v13 = vsel %vm428_vm11, %v2806_v61, %v2775_v10  ;;  %v2793_v20 = vsel %vm428_vm11, %v2791_v37, %v2740_v9 }
 0x1fe   : > { %v2780_v35 = vpop.permute.xlu1 %2779  ;;  %v2745_v54 = vpop.permute.xlu0 %2744 }
 0x1ff   : > { %v2810_v14 = vsel %vm431_vm12, %v2808_v13, %v2780_v35  ;;  %v2795_v47 = vsel %vm431_vm12, %v2793_v20, %v2745_v54 }
 0x200   : > { %v3137_v26 = vcombine.low %v2795_v47, %v2810_v14 }
 0x202   : > { %2817 = vst [vmem:[#allocation2 + $0x20] sm:$0x33] %v3137_v26 }
 0x209   : > { %v2823_v55 = vld [vmem:[#allocation2 + $0x20] sm:$0x33] }
 0x20a   : > { %v3143_v15 = vcombine.high %v2823_v55, %v2823_v55  ;;  %v3142_v5 = vcombine.low %v2823_v55, %v2823_v55 }
 0x20c   : > { %3144 = vmatprep.subr.msk.bf16.mxu0 %vm2859_vm13, %v3143_v15  ;;  %v2861_v50 = vsel %vm2859_vm13, %v3142_v5, 0 }
 0x20d   : > { %2871 = vmatpush1.bf16.msra.mxu0 %v2861_v50 }
 0x20f   : > { %v2828_v24 = vpop.permute.xlu0 %2827 }
 0x210   : > { %3145 = vmatmul.mubr.msk.bf16.vlgmr.msra.gmra.mrb[0].mxu0 %vm2855_vm14, %v2818_v44 }
 0x2e3   : > { %v2900_v52 = vpop.f32.mrb[0].mxu0 }
 0x2e4   : > { %v2901_v16 = vadd.f32 %v2900_v52, %v2828_v24  ;;  %v2902_v8 = vpop.f32.mrb[1].mxu0 }
 0x2e5   : > { %v2903_v32 = vadd.f32 %v2902_v8, %v2828_v24  ;;  %v2904_v59 = vpop.f32.mrb[2].mxu0 }
 0x2e6   : > { %v2907_v60 = vmul.f32 0.5, %v2901_v16  ;;  %v2905_v22 = vpop.f32.mrb[3].mxu0 }
 0x2e7   : > { %v2908_v48 = vmul.f32 0.5, %v2903_v32 }
 0x2e8   : > { %3285 = vtanh.f32 %v2907_v60 }
 0x2e9   : > { %3287 = vtanh.f32 %v2908_v48 }
 0x2f2   : > { %v3286_v51 = vpop.eup %3285 }
 0x2f3   : > { %v3288_v12 = vpop.eup %3287  ;;  %v2911_v23 = vadd.f32 1.0, %v3286_v51 }
 0x2f4   : > { %v2912_v43 = vadd.f32 1.0, %v3288_v12 }
 0x2f5   : > { %v2913_v7 = vmul.f32 0.5, %v2911_v23 }
 0x2f6   : > { %v2914_v42 = vmul.f32 0.5, %v2912_v43 }
 0x2f7   : > { %v2915_v46 = vmul.f32 %v2913_v7, %v2901_v16 }
 0x2f8   : > { %v2916_v2 = vmul.f32 %v2914_v42, %v2903_v32 }
 0x2f9   : > { %2917 = vst [vmem:[%s163_s27] sm:$0xff] %v2915_v46 }
 0x2fa   : > { %2918 = vst [vmem:[%s163_s27 + $0x8] sm:$0xff] %v2916_v2 }
 0x2fb   : > { %3302 = shalt.err (!%p3299_p3)
}
 0x2fc   : > { %s3303_s9 = scalar_lea.hbm %s5225_s4, 256  ;;  %s3307_s17 = scalar_lea.hbm %s5270_s3, 512 }
 0x2fd   : > { %p3304_p4 = scmp.ne.s32.totalorder %s5225_s4, %s3303_s9  ;;  %p3308_p9 = scmp.lt.u32.totalorder %s5225_s4, %s5270_s3 }
 0x2fe   : > { %p3309_p10 = scmp.lt.u32.totalorder %s3307_s17, %s3303_s9  ;;  %p3311_p12 = scmp.lt.u32.totalorder %s3303_s9, %s5225_s4 }
 0x2ff   : > { %p3305_p7 = pnand %p3304_p4, %p3424_p5 }
 0x300   : > { %p3310_p11 = por %p3309_p10, %p3308_p9 }
 0x301   : > { %p3306_p8 = pneg %p3305_p7 }
 0x302   : > { %p3312_p13 = por %p3311_p12, %p3310_p11 }
 0x304   : > { %p3313_p0 = pnand %p3312_p13, %p3306_p8 }
 0x306   : > { %3316 = shalt.err (!%p3313_p0)
}
 0x307   : > { %3225 = dma.vmem_to_hbm [thread:$0]  (%p3424_p5), %s5227_s28, 256, %s5225_s4, %s2920_s5  }
 0x308 PF: > { %p3231_p1 = scmp.ge.s32.totalorder %s3351_s15, 2  ;;  %s2946_s24 = sand.u32 1, %s3339_s12  }
 0x309   : > { %s2947_s25 = scalar_lea.sflag [#allocation4], %s2946_s24 }
 0x30a   : > { %p3228_p2 = pnand %p3231_p1, %p3428_p6 }
 0x30c   : > { %3334 = dma.done.wait (!%p3228_p2), %s2947_s25, 256  }
 0x30d   : > { %3336 = vsyncadd (!%p3228_p2), %s2947_s25, 4294967040  ;;  %p13_p3 = scmp.ge.s32.totalorder %s3411_s18, 4   ;;  %s5427_s12 = smov %s3343_s13 }
 0x30e   : > { %s5428_s13 = smov %s3347_s14  ;;  %s5429_s14 = smov %s3422_s21 }
 0x30f   : > { %s5430_s15 = smov %s3411_s18  ;;  %15 = sbr.rel (!%p13_p3) target bundleno = 3 (0x3), region = 67 }
 0x316   :  { %2952 = vsyncpa [#allocation4], 1 }
 0x317   :  { %2954 = vsyncpa [#allocation4 + $0x1], 1 }

</bundles_post_ra>
